<compile_context>
chip_gen: v5e
topology: v5e:2x2
jax: 0.10.0
libtpu: 0.0.40
codegen_flags: <defaults>
</compile_context>

<pallas_src>
import functools

import jax
import jax.numpy as jnp
from jax import lax
from jax.experimental import pallas as pl
from jax.experimental.pallas import tpu as pltpu


# ---------------------------------------------------------------------------
# Fused Pallas kernel
# ---------------------------------------------------------------------------
def _ghost_bottleneck_kernel(x_ref,
                             w_pw1_ref, b_pw1_ref, w_dw1_ref, b_dw1_ref,
                             w_pw2a_ref, w_pw2b_ref, b_pw2_ref,
                             w_dw2_ref, b_dw2_ref,
                             o_ref, *, H, W, bt, c1, c2):
    """bt batch images laid out (bt*C, H*W): batch+channels on sublanes, flattened
    spatial lane-dense.  out = GhostConv2(GhostConv1(x)) + x, all in registers."""
    HW = H * W
    cg1 = w_dw1_ref.shape[0] // bt       # primary channels of GhostConv1 (per image)
    cg2 = w_dw2_ref.shape[0] // bt       # primary channels of GhostConv2 (per image)

    x = x_ref[...].astype(jnp.float32)   # (bt*c1, HW)

    # ---- SAME-padding masks, hoisted once, shared by both depthwise stages ----
    # Rolls are circular; these masks zero exactly the wrapped (out-of-image)
    # positions.  Each sublane row is one image plane, so rolls never mix
    # channels or batch elements.
    iota = lax.broadcasted_iota(jnp.int32, (1, HW), 1)
    if (W & (W - 1)) == 0:               # power-of-two fast path (shift/and on VPU)
        col = iota & (W - 1)
        row = iota >> (W.bit_length() - 1)
    else:
        col = iota % W
        row = iota // W
    col_masks = [((col + (kw - 2) >= 0) & (col + (kw - 2) < W)).astype(jnp.float32)
                 for kw in range(5)]
    row_masks = [((row + (kh - 2) >= 0) & (row + (kh - 2) < H)).astype(jnp.float32)
                 for kh in range(5)]

    def lane_roll(a, off):
        """result[:, l] = a[:, (l + off) mod HW]  (circular; caller masks)."""
        s = (-off) % HW
        return a if s == 0 else pltpu.roll(a, s, 1)

    def silu(z):
        return z * jax.nn.sigmoid(z)

    def pointwise(parts, ws, b, act):
        """1x1 conv + folded-BN bias (+ SiLU) on the MXU.

        `ws` are block-diagonal-over-batch weights (kron(I_bt, W)), one per input
        part, so the GhostConv channel concat stays implicit (no in-kernel concat).
        """
        acc = jnp.dot(ws[0], parts[0], preferred_element_type=jnp.float32)
        for w_i, p_i in zip(ws[1:], parts[1:]):
            acc = acc + jnp.dot(w_i, p_i, preferred_element_type=jnp.float32)
        z = acc + b
        return silu(z) if act else z

    def depthwise5x5(y, w, b, act):
        """5x5 depthwise conv (SAME, pad=2) + folded-BN bias (+ SiLU).

        All 25 taps come from register rolls (XLU) instead of VMEM slices:
        5 column-masked kw-shifted planes (4 rolls), then per kh a weighted plane
        sum followed by ONE row roll + row mask (weights are lane-constants, so
        they commute with the row roll).  No scratch, no zero sweeps.
        """
        planes = [y if kw == 2 else col_masks[kw] * lane_roll(y, kw - 2)
                  for kw in range(5)]
        acc = None
        for kh in range(5):
            s = None
            for kw in range(5):
                t = w[:, kh * 5 + kw:kh * 5 + kw + 1] * planes[kw]
                s = t if s is None else s + t
            if kh != 2:
                s = row_masks[kh] * lane_roll(s, (kh - 2) * W)
            acc = s if acc is None else acc + s
        z = acc + b
        return silu(z) if act else z

    # GhostConv(c1, c2 // 2): SiLU on both halves.
    y1a = pointwise([x], [w_pw1_ref[...]], b_pw1_ref[...], act=True)
    y1b = depthwise5x5(y1a, w_dw1_ref[...], b_dw1_ref[...], act=True)

    # (s == 1: the DWConv stage between the two GhostConvs is nn.Identity.)

    # GhostConv(c2 // 2, c2): BN only (act=False) on both halves.
    y2a = pointwise([y1a, y1b], [w_pw2a_ref[...], w_pw2b_ref[...]],
                    b_pw2_ref[...], act=False)
    y2b = depthwise5x5(y2a, w_dw2_ref[...], b_dw2_ref[...], act=False)

    # out = concat([y2a, y2b], channel) + x per image (identity shortcut fused);
    # realized as full-lane-width stores of each channel half (residual in f32).
    for b in range(bt):
        o_ref[b * c2:b * c2 + cg2, :] = (
            y2a[b * cg2:(b + 1) * cg2, :] + x[b * c1:b * c1 + cg2, :]
        ).astype(o_ref.dtype)
        o_ref[b * c2 + cg2:(b + 1) * c2, :] = (
            y2b[b * cg2:(b + 1) * cg2, :] + x[b * c1 + cg2:b * c1 + c2, :]
        ).astype(o_ref.dtype)


# ---------------------------------------------------------------------------
# Wrapper
# ---------------------------------------------------------------------------
def ghost_bottleneck_forward(x_nchw, params, *, batch_tile=None):
    """GhostBottleneck (k=3, s=1) forward on an NCHW input."""
    B, C1, H, W = x_nchw.shape
    HW = H * W
    cg1 = params["w_pw1"].shape[0]
    cg2 = params["w_pw2"].shape[0]
    C2 = 2 * cg2
    assert C1 == C2, "identity shortcut requires c1 == c2"
    assert params["w_pw2"].shape[1] == 2 * cg1

    # Single grid step with the whole batch folded in (best on 1-TC v5e/v6e);
    # pass batch_tile < B to re-expose a "parallel" batch axis (v7x megacore).
    bt = B if batch_tile is None else batch_tile
    assert B % bt == 0
    num_tiles = B // bt
    if num_tiles > 1:
        assert (bt * C1) % 8 == 0 and HW % 128 == 0, "batch tile must be (8,128)-aligned"

    # NCHW -> (B*C, H*W): pure reshape (no transpose / HBM copy).  Batch+channels
    # land on sublanes, flattened spatial (multiple of 128) is lane-dense.
    x_flat = x_nchw.reshape(B * C1, HW)

    # Fold the per-step batch group into the (tiny) weights once, outside the
    # kernel: block-diagonal 1x1 weights, row-tiled depthwise weights / biases.
    eye = jnp.eye(bt, dtype=jnp.float32)

    def bd(w):                     # block-diagonal over the bt images of one step
        return jnp.kron(eye, w)

    def rep(a):                    # replicate rows per image
        return jnp.tile(a, (bt, 1))

    w_pw2 = params["w_pw2"]
    weight_args = [
        bd(params["w_pw1"]), rep(params["b_pw1"]),
        rep(params["w_dw1"]), rep(params["b_dw1"]),
        bd(w_pw2[:, :cg1]), bd(w_pw2[:, cg1:]), rep(params["b_pw2"]),
        rep(params["w_dw2"]), rep(params["b_dw2"]),
    ]

    kernel = functools.partial(_ghost_bottleneck_kernel,
                               H=H, W=W, bt=bt, c1=C1, c2=C2)

    out_flat = pl.pallas_call(
        kernel,
        out_shape=jax.ShapeDtypeStruct((B * C2, HW), x_nchw.dtype),
        grid=(num_tiles,),
        in_specs=[pl.BlockSpec((bt * C1, HW), lambda i: (i, 0))]
                 + [pl.BlockSpec(a.shape, lambda i: (0, 0)) for a in weight_args],
        out_specs=pl.BlockSpec((bt * C2, HW), lambda i: (i, 0)),
        compiler_params=pltpu.CompilerParams(
            dimension_semantics=("parallel",)),
    )(x_flat, *weight_args)

    return out_flat.reshape(B, C2, H, W)


# ---------------------------------------------------------------------------
# Deterministic parameter init + BatchNorm folding
# ---------------------------------------------------------------------------
def _bn_scale_bias(key, c, eps=1e-3):
    kg, kb, km, kv = jax.random.split(key, 4)
    gamma = 1.0 + 0.1 * jax.random.normal(kg, (c,), jnp.float32)
    beta = 0.1 * jax.random.normal(kb, (c,), jnp.float32)
    mean = 0.1 * jax.random.normal(km, (c,), jnp.float32)
    var = 1.0 + 0.1 * jnp.abs(jax.random.normal(kv, (c,), jnp.float32))
    scale = gamma * lax.rsqrt(var + eps)
    return scale, beta - mean * scale


def _folded_pointwise(key, cin, cout):
    kw, kbn = jax.random.split(key)
    w = 0.3 * jax.random.normal(kw, (cout, cin), jnp.float32)
    scale, bias = _bn_scale_bias(kbn, cout)
    return w * scale[:, None], bias.reshape(cout, 1)


def _folded_depthwise(key, c):
    kw, kbn = jax.random.split(key)
    w = 0.3 * jax.random.normal(kw, (c, 5, 5), jnp.float32)
    scale, bias = _bn_scale_bias(kbn, c)
    return (w * scale[:, None, None]).reshape(c, 25), bias.reshape(c, 1)


def init_ghost_bottleneck_params(key, c1, c2):
    c_mid = c2 // 2          # hidden width between the two GhostConvs
    cg1 = c_mid // 2         # primary channels inside GhostConv(c1, c_mid)
    cg2 = c2 // 2            # primary channels inside GhostConv(c_mid, c2)
    k1, k2, k3, k4 = jax.random.split(key, 4)
    w_pw1, b_pw1 = _folded_pointwise(k1, c1, cg1)
    w_dw1, b_dw1 = _folded_depthwise(k2, cg1)
    w_pw2, b_pw2 = _folded_pointwise(k3, c_mid, cg2)
    w_dw2, b_dw2 = _folded_depthwise(k4, cg2)
    return dict(w_pw1=w_pw1, b_pw1=b_pw1, w_dw1=w_dw1, b_dw1=b_dw1,
                w_pw2=w_pw2, b_pw2=b_pw2, w_dw2=w_dw2, b_dw2=b_dw2)


# ---------------------------------------------------------------------------
# Pure-JAX reference (for correctness check)
# ---------------------------------------------------------------------------
def _ref_conv1x1(x, w, b, act):
    y = lax.conv_general_dilated(
        x, w[:, :, None, None], window_strides=(1, 1), padding="SAME",
        dimension_numbers=("NCHW", "OIHW", "NCHW"))
    y = y + b.reshape(1, -1, 1, 1)
    return y * jax.nn.sigmoid(y) if act else y


def _ref_dwconv5x5(x, w, b, act):
    c = x.shape[1]
    y = lax.conv_general_dilated(
        x, w.reshape(c, 1, 5, 5), window_strides=(1, 1), padding="SAME",
        dimension_numbers=("NCHW", "OIHW", "NCHW"), feature_group_count=c)
    y = y + b.reshape(1, -1, 1, 1)
    return y * jax.nn.sigmoid(y) if act else y


def _ref_ghost_conv(x, wp, bp, wd, bd_, act):
    y = _ref_conv1x1(x, wp, bp, act)
    return jnp.concatenate([y, _ref_dwconv5x5(y, wd, bd_, act)], axis=1)


def _ref_ghost_bottleneck(x, p):
    y = _ref_ghost_conv(x, p["w_pw1"], p["b_pw1"], p["w_dw1"], p["b_dw1"], act=True)
    y = _ref_ghost_conv(y, p["w_pw2"], p["b_pw2"], p["w_dw2"], p["b_dw2"], act=False)
    return y + x      # shortcut = nn.Identity() for s == 1


# ---------------------------------------------------------------------------
if __name__ == "__main__":
    key = jax.random.PRNGKey(0)
    kx, kp = jax.random.split(key)

    B, C, H, W = 2, 8, 16, 16            # c1 == c2 == 8, default k=3, s=1
    x = jax.random.normal(kx, (B, C, H, W), jnp.float32)   # PyTorch NCHW layout

    params = init_ghost_bottleneck_params(kp, C, C)

    fwd = jax.jit(ghost_bottleneck_forward)
    out = fwd(x, params)
    out = jax.block_until_ready(out)

    ref = _ref_ghost_bottleneck(x, params)
    assert out.shape == (B, C, H, W)
    # Tolerance covers reduced-precision (bf16-pass) MXU f32 matmuls on some TPU
    # generations for the in-kernel 1x1 convs; depthwise taps, SiLU and the
    # residual add are exact f32.
    assert jnp.allclose(out, ref, atol=3e-2, rtol=2e-2), "mismatch vs pure-JAX reference"

    print("KERNEL_OK")
</pallas_src>

<mosaic_0001>
module attributes {stable_mosaic.version = 11 : i64} {
  func.func @_ghost_bottleneck_kernel(%arg0: i32, %arg1: memref<16x256xf32, #tpu.memory_space<vmem>>, %arg2: memref<4x16xf32, #tpu.memory_space<vmem>>, %arg3: memref<4x1xf32, #tpu.memory_space<vmem>>, %arg4: memref<4x25xf32, #tpu.memory_space<vmem>>, %arg5: memref<4x1xf32, #tpu.memory_space<vmem>>, %arg6: memref<8x4xf32, #tpu.memory_space<vmem>>, %arg7: memref<8x4xf32, #tpu.memory_space<vmem>>, %arg8: memref<8x1xf32, #tpu.memory_space<vmem>>, %arg9: memref<8x25xf32, #tpu.memory_space<vmem>>, %arg10: memref<8x1xf32, #tpu.memory_space<vmem>>, %arg11: memref<16x256xf32, #tpu.memory_space<vmem>>) attributes {dimension_semantics = [#tpu.dimension_semantics<parallel>], iteration_bounds = array<i64: 1>, scalar_prefetch = 0 : i64, scratch_operands = 0 : i64, tpu.core_type = #tpu.core_type<tc>, window_params = [{transform_indices = @transform_0, window_bounds = array<i64: 16, 256>}, {pipeline_mode = #tpu.pipeline_mode<synchronous>, transform_indices = @transform_1, window_bounds = array<i64: 4, 16>}, {pipeline_mode = #tpu.pipeline_mode<synchronous>, transform_indices = @transform_2, window_bounds = array<i64: 4, 1>}, {pipeline_mode = #tpu.pipeline_mode<synchronous>, transform_indices = @transform_3, window_bounds = array<i64: 4, 25>}, {pipeline_mode = #tpu.pipeline_mode<synchronous>, transform_indices = @transform_4, window_bounds = array<i64: 4, 1>}, {pipeline_mode = #tpu.pipeline_mode<synchronous>, transform_indices = @transform_5, window_bounds = array<i64: 8, 4>}, {pipeline_mode = #tpu.pipeline_mode<synchronous>, transform_indices = @transform_6, window_bounds = array<i64: 8, 4>}, {pipeline_mode = #tpu.pipeline_mode<synchronous>, transform_indices = @transform_7, window_bounds = array<i64: 8, 1>}, {pipeline_mode = #tpu.pipeline_mode<synchronous>, transform_indices = @transform_8, window_bounds = array<i64: 8, 25>}, {pipeline_mode = #tpu.pipeline_mode<synchronous>, transform_indices = @transform_9, window_bounds = array<i64: 8, 1>}, {transform_indices = @transform_10, window_bounds = array<i64: 16, 256>}]} {
    %c0 = arith.constant 0 : index
    %c0_0 = arith.constant 0 : index
    %0 = vector.load %arg1[%c0, %c0_0] : memref<16x256xf32, #tpu.memory_space<vmem>>, vector<16x256xf32>
    %1 = tpu.iota {dimensions = array<i32: 1>} : vector<1x256xi32>
    %c15_i32 = arith.constant 15 : i32
    %2 = vector.broadcast %c15_i32 : i32 to vector<1x256xi32>
    %3 = arith.andi %1, %2 : vector<1x256xi32>
    %c4_i32 = arith.constant 4 : i32
    %4 = vector.broadcast %c4_i32 : i32 to vector<1x256xi32>
    %5 = arith.shrsi %1, %4 : vector<1x256xi32>
    %c-2_i32 = arith.constant -2 : i32
    %6 = vector.broadcast %c-2_i32 : i32 to vector<1x256xi32>
    %7 = arith.addi %3, %6 : vector<1x256xi32>
    %c0_i32 = arith.constant 0 : i32
    %8 = vector.broadcast %c0_i32 : i32 to vector<1x256xi32>
    %9 = arith.cmpi sge, %7, %8 : vector<1x256xi32>
    %c-2_i32_1 = arith.constant -2 : i32
    %10 = vector.broadcast %c-2_i32_1 : i32 to vector<1x256xi32>
    %11 = arith.addi %3, %10 : vector<1x256xi32>
    %c16_i32 = arith.constant 16 : i32
    %12 = vector.broadcast %c16_i32 : i32 to vector<1x256xi32>
    %13 = arith.cmpi slt, %11, %12 : vector<1x256xi32>
    %14 = arith.andi %9, %13 : vector<1x256xi1>
    %15 = arith.extui %14 : vector<1x256xi1> to vector<1x256xi32>
    %16 = arith.sitofp %15 : vector<1x256xi32> to vector<1x256xf32>
    %c-1_i32 = arith.constant -1 : i32
    %17 = vector.broadcast %c-1_i32 : i32 to vector<1x256xi32>
    %18 = arith.addi %3, %17 : vector<1x256xi32>
    %c0_i32_2 = arith.constant 0 : i32
    %19 = vector.broadcast %c0_i32_2 : i32 to vector<1x256xi32>
    %20 = arith.cmpi sge, %18, %19 : vector<1x256xi32>
    %c-1_i32_3 = arith.constant -1 : i32
    %21 = vector.broadcast %c-1_i32_3 : i32 to vector<1x256xi32>
    %22 = arith.addi %3, %21 : vector<1x256xi32>
    %c16_i32_4 = arith.constant 16 : i32
    %23 = vector.broadcast %c16_i32_4 : i32 to vector<1x256xi32>
    %24 = arith.cmpi slt, %22, %23 : vector<1x256xi32>
    %25 = arith.andi %20, %24 : vector<1x256xi1>
    %26 = arith.extui %25 : vector<1x256xi1> to vector<1x256xi32>
    %27 = arith.sitofp %26 : vector<1x256xi32> to vector<1x256xf32>
    %c1_i32 = arith.constant 1 : i32
    %28 = vector.broadcast %c1_i32 : i32 to vector<1x256xi32>
    %29 = arith.addi %3, %28 : vector<1x256xi32>
    %c0_i32_5 = arith.constant 0 : i32
    %30 = vector.broadcast %c0_i32_5 : i32 to vector<1x256xi32>
    %31 = arith.cmpi sge, %29, %30 : vector<1x256xi32>
    %c1_i32_6 = arith.constant 1 : i32
    %32 = vector.broadcast %c1_i32_6 : i32 to vector<1x256xi32>
    %33 = arith.addi %3, %32 : vector<1x256xi32>
    %c16_i32_7 = arith.constant 16 : i32
    %34 = vector.broadcast %c16_i32_7 : i32 to vector<1x256xi32>
    %35 = arith.cmpi slt, %33, %34 : vector<1x256xi32>
    %36 = arith.andi %31, %35 : vector<1x256xi1>
    %37 = arith.extui %36 : vector<1x256xi1> to vector<1x256xi32>
    %38 = arith.sitofp %37 : vector<1x256xi32> to vector<1x256xf32>
    %c2_i32 = arith.constant 2 : i32
    %39 = vector.broadcast %c2_i32 : i32 to vector<1x256xi32>
    %40 = arith.addi %3, %39 : vector<1x256xi32>
    %c0_i32_8 = arith.constant 0 : i32
    %41 = vector.broadcast %c0_i32_8 : i32 to vector<1x256xi32>
    %42 = arith.cmpi sge, %40, %41 : vector<1x256xi32>
    %c2_i32_9 = arith.constant 2 : i32
    %43 = vector.broadcast %c2_i32_9 : i32 to vector<1x256xi32>
    %44 = arith.addi %3, %43 : vector<1x256xi32>
    %c16_i32_10 = arith.constant 16 : i32
    %45 = vector.broadcast %c16_i32_10 : i32 to vector<1x256xi32>
    %46 = arith.cmpi slt, %44, %45 : vector<1x256xi32>
    %47 = arith.andi %42, %46 : vector<1x256xi1>
    %48 = arith.extui %47 : vector<1x256xi1> to vector<1x256xi32>
    %49 = arith.sitofp %48 : vector<1x256xi32> to vector<1x256xf32>
    %c-2_i32_11 = arith.constant -2 : i32
    %50 = vector.broadcast %c-2_i32_11 : i32 to vector<1x256xi32>
    %51 = arith.addi %5, %50 : vector<1x256xi32>
    %c0_i32_12 = arith.constant 0 : i32
    %52 = vector.broadcast %c0_i32_12 : i32 to vector<1x256xi32>
    %53 = arith.cmpi sge, %51, %52 : vector<1x256xi32>
    %c-2_i32_13 = arith.constant -2 : i32
    %54 = vector.broadcast %c-2_i32_13 : i32 to vector<1x256xi32>
    %55 = arith.addi %5, %54 : vector<1x256xi32>
    %c16_i32_14 = arith.constant 16 : i32
    %56 = vector.broadcast %c16_i32_14 : i32 to vector<1x256xi32>
    %57 = arith.cmpi slt, %55, %56 : vector<1x256xi32>
    %58 = arith.andi %53, %57 : vector<1x256xi1>
    %59 = arith.extui %58 : vector<1x256xi1> to vector<1x256xi32>
    %60 = arith.sitofp %59 : vector<1x256xi32> to vector<1x256xf32>
    %c-1_i32_15 = arith.constant -1 : i32
    %61 = vector.broadcast %c-1_i32_15 : i32 to vector<1x256xi32>
    %62 = arith.addi %5, %61 : vector<1x256xi32>
    %c0_i32_16 = arith.constant 0 : i32
    %63 = vector.broadcast %c0_i32_16 : i32 to vector<1x256xi32>
    %64 = arith.cmpi sge, %62, %63 : vector<1x256xi32>
    %c-1_i32_17 = arith.constant -1 : i32
    %65 = vector.broadcast %c-1_i32_17 : i32 to vector<1x256xi32>
    %66 = arith.addi %5, %65 : vector<1x256xi32>
    %c16_i32_18 = arith.constant 16 : i32
    %67 = vector.broadcast %c16_i32_18 : i32 to vector<1x256xi32>
    %68 = arith.cmpi slt, %66, %67 : vector<1x256xi32>
    %69 = arith.andi %64, %68 : vector<1x256xi1>
    %70 = arith.extui %69 : vector<1x256xi1> to vector<1x256xi32>
    %71 = arith.sitofp %70 : vector<1x256xi32> to vector<1x256xf32>
    %c1_i32_19 = arith.constant 1 : i32
    %72 = vector.broadcast %c1_i32_19 : i32 to vector<1x256xi32>
    %73 = arith.addi %5, %72 : vector<1x256xi32>
    %c0_i32_20 = arith.constant 0 : i32
    %74 = vector.broadcast %c0_i32_20 : i32 to vector<1x256xi32>
    %75 = arith.cmpi sge, %73, %74 : vector<1x256xi32>
    %c1_i32_21 = arith.constant 1 : i32
    %76 = vector.broadcast %c1_i32_21 : i32 to vector<1x256xi32>
    %77 = arith.addi %5, %76 : vector<1x256xi32>
    %c16_i32_22 = arith.constant 16 : i32
    %78 = vector.broadcast %c16_i32_22 : i32 to vector<1x256xi32>
    %79 = arith.cmpi slt, %77, %78 : vector<1x256xi32>
    %80 = arith.andi %75, %79 : vector<1x256xi1>
    %81 = arith.extui %80 : vector<1x256xi1> to vector<1x256xi32>
    %82 = arith.sitofp %81 : vector<1x256xi32> to vector<1x256xf32>
    %c2_i32_23 = arith.constant 2 : i32
    %83 = vector.broadcast %c2_i32_23 : i32 to vector<1x256xi32>
    %84 = arith.addi %5, %83 : vector<1x256xi32>
    %c0_i32_24 = arith.constant 0 : i32
    %85 = vector.broadcast %c0_i32_24 : i32 to vector<1x256xi32>
    %86 = arith.cmpi sge, %84, %85 : vector<1x256xi32>
    %c2_i32_25 = arith.constant 2 : i32
    %87 = vector.broadcast %c2_i32_25 : i32 to vector<1x256xi32>
    %88 = arith.addi %5, %87 : vector<1x256xi32>
    %c16_i32_26 = arith.constant 16 : i32
    %89 = vector.broadcast %c16_i32_26 : i32 to vector<1x256xi32>
    %90 = arith.cmpi slt, %88, %89 : vector<1x256xi32>
    %91 = arith.andi %86, %90 : vector<1x256xi1>
    %92 = arith.extui %91 : vector<1x256xi1> to vector<1x256xi32>
    %93 = arith.sitofp %92 : vector<1x256xi32> to vector<1x256xf32>
    %c0_27 = arith.constant 0 : index
    %c0_28 = arith.constant 0 : index
    %94 = vector.load %arg2[%c0_27, %c0_28] : memref<4x16xf32, #tpu.memory_space<vmem>>, vector<4x16xf32>
    %c0_29 = arith.constant 0 : index
    %c0_30 = arith.constant 0 : index
    %95 = vector.load %arg3[%c0_29, %c0_30] : memref<4x1xf32, #tpu.memory_space<vmem>>, vector<4x1xf32>
    %cst = arith.constant dense<0.000000e+00> : vector<4x256xf32>
    %96 = tpu.matmul %94, %0, %cst {dimension_numbers = #tpu.dot_dimension_numbers<[1], [0], [0], [1], [0, 0, 1, 1], [], []>} : vector<4x16xf32>, vector<16x256xf32>, vector<4x256xf32> -> vector<4x256xf32>
    %97 = vector.broadcast %95 : vector<4x1xf32> to vector<4x256xf32>
    %98 = arith.addf %96, %97 : vector<4x256xf32>
    %99 = arith.negf %98 : vector<4x256xf32>
    %100 = math.exp %99 : vector<4x256xf32>
    %cst_31 = arith.constant 1.000000e+00 : f32
    %101 = vector.broadcast %cst_31 : f32 to vector<4x256xf32>
    %102 = arith.addf %101, %100 : vector<4x256xf32>
    %103 = arith.divf %101, %102 : vector<4x256xf32>
    %104 = arith.mulf %98, %103 : vector<4x256xf32>
    %c0_32 = arith.constant 0 : index
    %c0_33 = arith.constant 0 : index
    %105 = vector.load %arg4[%c0_32, %c0_33] : memref<4x25xf32, #tpu.memory_space<vmem>>, vector<4x25xf32>
    %c0_34 = arith.constant 0 : index
    %c0_35 = arith.constant 0 : index
    %106 = vector.load %arg5[%c0_34, %c0_35] : memref<4x1xf32, #tpu.memory_space<vmem>>, vector<4x1xf32>
    %c2_i32_36 = arith.constant 2 : i32
    %107 = tpu.dynamic_rotate %104 by %c2_i32_36 dim 1 : vector<4x256xf32>, i32 -> vector<4x256xf32>
    %108 = vector.broadcast %16 : vector<1x256xf32> to vector<4x256xf32>
    %109 = arith.mulf %108, %107 : vector<4x256xf32>
    %c1_i32_37 = arith.constant 1 : i32
    %110 = tpu.dynamic_rotate %104 by %c1_i32_37 dim 1 : vector<4x256xf32>, i32 -> vector<4x256xf32>
    %111 = vector.broadcast %27 : vector<1x256xf32> to vector<4x256xf32>
    %112 = arith.mulf %111, %110 : vector<4x256xf32>
    %c255_i32 = arith.constant 255 : i32
    %113 = tpu.dynamic_rotate %104 by %c255_i32 dim 1 : vector<4x256xf32>, i32 -> vector<4x256xf32>
    %114 = vector.broadcast %38 : vector<1x256xf32> to vector<4x256xf32>
    %115 = arith.mulf %114, %113 : vector<4x256xf32>
    %c254_i32 = arith.constant 254 : i32
    %116 = tpu.dynamic_rotate %104 by %c254_i32 dim 1 : vector<4x256xf32>, i32 -> vector<4x256xf32>
    %117 = vector.broadcast %49 : vector<1x256xf32> to vector<4x256xf32>
    %118 = arith.mulf %117, %116 : vector<4x256xf32>
    %119 = vector.extract_strided_slice %105 {offsets = [0, 0], sizes = [4, 1], strides = [1, 1]} : vector<4x25xf32> to vector<4x1xf32>
    %120 = vector.broadcast %119 : vector<4x1xf32> to vector<4x256xf32>
    %121 = arith.mulf %120, %109 : vector<4x256xf32>
    %122 = vector.extract_strided_slice %105 {offsets = [0, 1], sizes = [4, 1], strides = [1, 1]} : vector<4x25xf32> to vector<4x1xf32>
    %123 = vector.broadcast %122 : vector<4x1xf32> to vector<4x256xf32>
    %124 = arith.mulf %123, %112 : vector<4x256xf32>
    %125 = arith.addf %121, %124 : vector<4x256xf32>
    %126 = vector.extract_strided_slice %105 {offsets = [0, 2], sizes = [4, 1], strides = [1, 1]} : vector<4x25xf32> to vector<4x1xf32>
    %127 = vector.broadcast %126 : vector<4x1xf32> to vector<4x256xf32>
    %128 = arith.mulf %127, %104 : vector<4x256xf32>
    %129 = arith.addf %125, %128 : vector<4x256xf32>
    %130 = vector.extract_strided_slice %105 {offsets = [0, 3], sizes = [4, 1], strides = [1, 1]} : vector<4x25xf32> to vector<4x1xf32>
    %131 = vector.broadcast %130 : vector<4x1xf32> to vector<4x256xf32>
    %132 = arith.mulf %131, %115 : vector<4x256xf32>
    %133 = arith.addf %129, %132 : vector<4x256xf32>
    %134 = vector.extract_strided_slice %105 {offsets = [0, 4], sizes = [4, 1], strides = [1, 1]} : vector<4x25xf32> to vector<4x1xf32>
    %135 = vector.broadcast %134 : vector<4x1xf32> to vector<4x256xf32>
    %136 = arith.mulf %135, %118 : vector<4x256xf32>
    %137 = arith.addf %133, %136 : vector<4x256xf32>
    %c32_i32 = arith.constant 32 : i32
    %138 = tpu.dynamic_rotate %137 by %c32_i32 dim 1 : vector<4x256xf32>, i32 -> vector<4x256xf32>
    %139 = vector.broadcast %60 : vector<1x256xf32> to vector<4x256xf32>
    %140 = arith.mulf %139, %138 : vector<4x256xf32>
    %141 = vector.extract_strided_slice %105 {offsets = [0, 5], sizes = [4, 1], strides = [1, 1]} : vector<4x25xf32> to vector<4x1xf32>
    %142 = vector.broadcast %141 : vector<4x1xf32> to vector<4x256xf32>
    %143 = arith.mulf %142, %109 : vector<4x256xf32>
    %144 = vector.extract_strided_slice %105 {offsets = [0, 6], sizes = [4, 1], strides = [1, 1]} : vector<4x25xf32> to vector<4x1xf32>
    %145 = vector.broadcast %144 : vector<4x1xf32> to vector<4x256xf32>
    %146 = arith.mulf %145, %112 : vector<4x256xf32>
    %147 = arith.addf %143, %146 : vector<4x256xf32>
    %148 = vector.extract_strided_slice %105 {offsets = [0, 7], sizes = [4, 1], strides = [1, 1]} : vector<4x25xf32> to vector<4x1xf32>
    %149 = vector.broadcast %148 : vector<4x1xf32> to vector<4x256xf32>
    %150 = arith.mulf %149, %104 : vector<4x256xf32>
    %151 = arith.addf %147, %150 : vector<4x256xf32>
    %152 = vector.extract_strided_slice %105 {offsets = [0, 8], sizes = [4, 1], strides = [1, 1]} : vector<4x25xf32> to vector<4x1xf32>
    %153 = vector.broadcast %152 : vector<4x1xf32> to vector<4x256xf32>
    %154 = arith.mulf %153, %115 : vector<4x256xf32>
    %155 = arith.addf %151, %154 : vector<4x256xf32>
    %156 = vector.extract_strided_slice %105 {offsets = [0, 9], sizes = [4, 1], strides = [1, 1]} : vector<4x25xf32> to vector<4x1xf32>
    %157 = vector.broadcast %156 : vector<4x1xf32> to vector<4x256xf32>
    %158 = arith.mulf %157, %118 : vector<4x256xf32>
    %159 = arith.addf %155, %158 : vector<4x256xf32>
    %c16_i32_38 = arith.constant 16 : i32
    %160 = tpu.dynamic_rotate %159 by %c16_i32_38 dim 1 : vector<4x256xf32>, i32 -> vector<4x256xf32>
    %161 = vector.broadcast %71 : vector<1x256xf32> to vector<4x256xf32>
    %162 = arith.mulf %161, %160 : vector<4x256xf32>
    %163 = arith.addf %140, %162 : vector<4x256xf32>
    %164 = vector.extract_strided_slice %105 {offsets = [0, 10], sizes = [4, 1], strides = [1, 1]} : vector<4x25xf32> to vector<4x1xf32>
    %165 = vector.broadcast %164 : vector<4x1xf32> to vector<4x256xf32>
    %166 = arith.mulf %165, %109 : vector<4x256xf32>
    %167 = vector.extract_strided_slice %105 {offsets = [0, 11], sizes = [4, 1], strides = [1, 1]} : vector<4x25xf32> to vector<4x1xf32>
    %168 = vector.broadcast %167 : vector<4x1xf32> to vector<4x256xf32>
    %169 = arith.mulf %168, %112 : vector<4x256xf32>
    %170 = arith.addf %166, %169 : vector<4x256xf32>
    %171 = vector.extract_strided_slice %105 {offsets = [0, 12], sizes = [4, 1], strides = [1, 1]} : vector<4x25xf32> to vector<4x1xf32>
    %172 = vector.broadcast %171 : vector<4x1xf32> to vector<4x256xf32>
    %173 = arith.mulf %172, %104 : vector<4x256xf32>
    %174 = arith.addf %170, %173 : vector<4x256xf32>
    %175 = vector.extract_strided_slice %105 {offsets = [0, 13], sizes = [4, 1], strides = [1, 1]} : vector<4x25xf32> to vector<4x1xf32>
    %176 = vector.broadcast %175 : vector<4x1xf32> to vector<4x256xf32>
    %177 = arith.mulf %176, %115 : vector<4x256xf32>
    %178 = arith.addf %174, %177 : vector<4x256xf32>
    %179 = vector.extract_strided_slice %105 {offsets = [0, 14], sizes = [4, 1], strides = [1, 1]} : vector<4x25xf32> to vector<4x1xf32>
    %180 = vector.broadcast %179 : vector<4x1xf32> to vector<4x256xf32>
    %181 = arith.mulf %180, %118 : vector<4x256xf32>
    %182 = arith.addf %178, %181 : vector<4x256xf32>
    %183 = arith.addf %163, %182 : vector<4x256xf32>
    %184 = vector.extract_strided_slice %105 {offsets = [0, 15], sizes = [4, 1], strides = [1, 1]} : vector<4x25xf32> to vector<4x1xf32>
    %185 = vector.broadcast %184 : vector<4x1xf32> to vector<4x256xf32>
    %186 = arith.mulf %185, %109 : vector<4x256xf32>
    %187 = vector.extract_strided_slice %105 {offsets = [0, 16], sizes = [4, 1], strides = [1, 1]} : vector<4x25xf32> to vector<4x1xf32>
    %188 = vector.broadcast %187 : vector<4x1xf32> to vector<4x256xf32>
    %189 = arith.mulf %188, %112 : vector<4x256xf32>
    %190 = arith.addf %186, %189 : vector<4x256xf32>
    %191 = vector.extract_strided_slice %105 {offsets = [0, 17], sizes = [4, 1], strides = [1, 1]} : vector<4x25xf32> to vector<4x1xf32>
    %192 = vector.broadcast %191 : vector<4x1xf32> to vector<4x256xf32>
    %193 = arith.mulf %192, %104 : vector<4x256xf32>
    %194 = arith.addf %190, %193 : vector<4x256xf32>
    %195 = vector.extract_strided_slice %105 {offsets = [0, 18], sizes = [4, 1], strides = [1, 1]} : vector<4x25xf32> to vector<4x1xf32>
    %196 = vector.broadcast %195 : vector<4x1xf32> to vector<4x256xf32>
    %197 = arith.mulf %196, %115 : vector<4x256xf32>
    %198 = arith.addf %194, %197 : vector<4x256xf32>
    %199 = vector.extract_strided_slice %105 {offsets = [0, 19], sizes = [4, 1], strides = [1, 1]} : vector<4x25xf32> to vector<4x1xf32>
    %200 = vector.broadcast %199 : vector<4x1xf32> to vector<4x256xf32>
    %201 = arith.mulf %200, %118 : vector<4x256xf32>
    %202 = arith.addf %198, %201 : vector<4x256xf32>
    %c240_i32 = arith.constant 240 : i32
    %203 = tpu.dynamic_rotate %202 by %c240_i32 dim 1 : vector<4x256xf32>, i32 -> vector<4x256xf32>
    %204 = vector.broadcast %82 : vector<1x256xf32> to vector<4x256xf32>
    %205 = arith.mulf %204, %203 : vector<4x256xf32>
    %206 = arith.addf %183, %205 : vector<4x256xf32>
    %207 = vector.extract_strided_slice %105 {offsets = [0, 20], sizes = [4, 1], strides = [1, 1]} : vector<4x25xf32> to vector<4x1xf32>
    %208 = vector.broadcast %207 : vector<4x1xf32> to vector<4x256xf32>
    %209 = arith.mulf %208, %109 : vector<4x256xf32>
    %210 = vector.extract_strided_slice %105 {offsets = [0, 21], sizes = [4, 1], strides = [1, 1]} : vector<4x25xf32> to vector<4x1xf32>
    %211 = vector.broadcast %210 : vector<4x1xf32> to vector<4x256xf32>
    %212 = arith.mulf %211, %112 : vector<4x256xf32>
    %213 = arith.addf %209, %212 : vector<4x256xf32>
    %214 = vector.extract_strided_slice %105 {offsets = [0, 22], sizes = [4, 1], strides = [1, 1]} : vector<4x25xf32> to vector<4x1xf32>
    %215 = vector.broadcast %214 : vector<4x1xf32> to vector<4x256xf32>
    %216 = arith.mulf %215, %104 : vector<4x256xf32>
    %217 = arith.addf %213, %216 : vector<4x256xf32>
    %218 = vector.extract_strided_slice %105 {offsets = [0, 23], sizes = [4, 1], strides = [1, 1]} : vector<4x25xf32> to vector<4x1xf32>
    %219 = vector.broadcast %218 : vector<4x1xf32> to vector<4x256xf32>
    %220 = arith.mulf %219, %115 : vector<4x256xf32>
    %221 = arith.addf %217, %220 : vector<4x256xf32>
    %222 = vector.extract_strided_slice %105 {offsets = [0, 24], sizes = [4, 1], strides = [1, 1]} : vector<4x25xf32> to vector<4x1xf32>
    %223 = vector.broadcast %222 : vector<4x1xf32> to vector<4x256xf32>
    %224 = arith.mulf %223, %118 : vector<4x256xf32>
    %225 = arith.addf %221, %224 : vector<4x256xf32>
    %c224_i32 = arith.constant 224 : i32
    %226 = tpu.dynamic_rotate %225 by %c224_i32 dim 1 : vector<4x256xf32>, i32 -> vector<4x256xf32>
    %227 = vector.broadcast %93 : vector<1x256xf32> to vector<4x256xf32>
    %228 = arith.mulf %227, %226 : vector<4x256xf32>
    %229 = arith.addf %206, %228 : vector<4x256xf32>
    %230 = vector.broadcast %106 : vector<4x1xf32> to vector<4x256xf32>
    %231 = arith.addf %229, %230 : vector<4x256xf32>
    %232 = arith.negf %231 : vector<4x256xf32>
    %233 = math.exp %232 : vector<4x256xf32>
    %cst_39 = arith.constant 1.000000e+00 : f32
    %234 = vector.broadcast %cst_39 : f32 to vector<4x256xf32>
    %235 = arith.addf %234, %233 : vector<4x256xf32>
    %236 = arith.divf %234, %235 : vector<4x256xf32>
    %237 = arith.mulf %231, %236 : vector<4x256xf32>
    %c0_40 = arith.constant 0 : index
    %c0_41 = arith.constant 0 : index
    %238 = vector.load %arg6[%c0_40, %c0_41] : memref<8x4xf32, #tpu.memory_space<vmem>>, vector<8x4xf32>
    %c0_42 = arith.constant 0 : index
    %c0_43 = arith.constant 0 : index
    %239 = vector.load %arg7[%c0_42, %c0_43] : memref<8x4xf32, #tpu.memory_space<vmem>>, vector<8x4xf32>
    %c0_44 = arith.constant 0 : index
    %c0_45 = arith.constant 0 : index
    %240 = vector.load %arg8[%c0_44, %c0_45] : memref<8x1xf32, #tpu.memory_space<vmem>>, vector<8x1xf32>
    %cst_46 = arith.constant dense<0.000000e+00> : vector<8x256xf32>
    %241 = tpu.matmul %238, %104, %cst_46 {dimension_numbers = #tpu.dot_dimension_numbers<[1], [0], [0], [1], [0, 0, 1, 1], [], []>} : vector<8x4xf32>, vector<4x256xf32>, vector<8x256xf32> -> vector<8x256xf32>
    %cst_47 = arith.constant dense<0.000000e+00> : vector<8x256xf32>
    %242 = tpu.matmul %239, %237, %cst_47 {dimension_numbers = #tpu.dot_dimension_numbers<[1], [0], [0], [1], [0, 0, 1, 1], [], []>} : vector<8x4xf32>, vector<4x256xf32>, vector<8x256xf32> -> vector<8x256xf32>
    %243 = arith.addf %241, %242 : vector<8x256xf32>
    %244 = vector.broadcast %240 : vector<8x1xf32> to vector<8x256xf32>
    %245 = arith.addf %243, %244 : vector<8x256xf32>
    %c0_48 = arith.constant 0 : index
    %c0_49 = arith.constant 0 : index
    %246 = vector.load %arg9[%c0_48, %c0_49] : memref<8x25xf32, #tpu.memory_space<vmem>>, vector<8x25xf32>
    %c0_50 = arith.constant 0 : index
    %c0_51 = arith.constant 0 : index
    %247 = vector.load %arg10[%c0_50, %c0_51] : memref<8x1xf32, #tpu.memory_space<vmem>>, vector<8x1xf32>
    %c2_i32_52 = arith.constant 2 : i32
    %248 = tpu.dynamic_rotate %245 by %c2_i32_52 dim 1 : vector<8x256xf32>, i32 -> vector<8x256xf32>
    %249 = vector.broadcast %16 : vector<1x256xf32> to vector<8x256xf32>
    %250 = arith.mulf %249, %248 : vector<8x256xf32>
    %c1_i32_53 = arith.constant 1 : i32
    %251 = tpu.dynamic_rotate %245 by %c1_i32_53 dim 1 : vector<8x256xf32>, i32 -> vector<8x256xf32>
    %252 = vector.broadcast %27 : vector<1x256xf32> to vector<8x256xf32>
    %253 = arith.mulf %252, %251 : vector<8x256xf32>
    %c255_i32_54 = arith.constant 255 : i32
    %254 = tpu.dynamic_rotate %245 by %c255_i32_54 dim 1 : vector<8x256xf32>, i32 -> vector<8x256xf32>
    %255 = vector.broadcast %38 : vector<1x256xf32> to vector<8x256xf32>
    %256 = arith.mulf %255, %254 : vector<8x256xf32>
    %c254_i32_55 = arith.constant 254 : i32
    %257 = tpu.dynamic_rotate %245 by %c254_i32_55 dim 1 : vector<8x256xf32>, i32 -> vector<8x256xf32>
    %258 = vector.broadcast %49 : vector<1x256xf32> to vector<8x256xf32>
    %259 = arith.mulf %258, %257 : vector<8x256xf32>
    %260 = vector.extract_strided_slice %246 {offsets = [0, 0], sizes = [8, 1], strides = [1, 1]} : vector<8x25xf32> to vector<8x1xf32>
    %261 = vector.broadcast %260 : vector<8x1xf32> to vector<8x256xf32>
    %262 = arith.mulf %261, %250 : vector<8x256xf32>
    %263 = vector.extract_strided_slice %246 {offsets = [0, 1], sizes = [8, 1], strides = [1, 1]} : vector<8x25xf32> to vector<8x1xf32>
    %264 = vector.broadcast %263 : vector<8x1xf32> to vector<8x256xf32>
    %265 = arith.mulf %264, %253 : vector<8x256xf32>
    %266 = arith.addf %262, %265 : vector<8x256xf32>
    %267 = vector.extract_strided_slice %246 {offsets = [0, 2], sizes = [8, 1], strides = [1, 1]} : vector<8x25xf32> to vector<8x1xf32>
    %268 = vector.broadcast %267 : vector<8x1xf32> to vector<8x256xf32>
    %269 = arith.mulf %268, %245 : vector<8x256xf32>
    %270 = arith.addf %266, %269 : vector<8x256xf32>
    %271 = vector.extract_strided_slice %246 {offsets = [0, 3], sizes = [8, 1], strides = [1, 1]} : vector<8x25xf32> to vector<8x1xf32>
    %272 = vector.broadcast %271 : vector<8x1xf32> to vector<8x256xf32>
    %273 = arith.mulf %272, %256 : vector<8x256xf32>
    %274 = arith.addf %270, %273 : vector<8x256xf32>
    %275 = vector.extract_strided_slice %246 {offsets = [0, 4], sizes = [8, 1], strides = [1, 1]} : vector<8x25xf32> to vector<8x1xf32>
    %276 = vector.broadcast %275 : vector<8x1xf32> to vector<8x256xf32>
    %277 = arith.mulf %276, %259 : vector<8x256xf32>
    %278 = arith.addf %274, %277 : vector<8x256xf32>
    %c32_i32_56 = arith.constant 32 : i32
    %279 = tpu.dynamic_rotate %278 by %c32_i32_56 dim 1 : vector<8x256xf32>, i32 -> vector<8x256xf32>
    %280 = vector.broadcast %60 : vector<1x256xf32> to vector<8x256xf32>
    %281 = arith.mulf %280, %279 : vector<8x256xf32>
    %282 = vector.extract_strided_slice %246 {offsets = [0, 5], sizes = [8, 1], strides = [1, 1]} : vector<8x25xf32> to vector<8x1xf32>
    %283 = vector.broadcast %282 : vector<8x1xf32> to vector<8x256xf32>
    %284 = arith.mulf %283, %250 : vector<8x256xf32>
    %285 = vector.extract_strided_slice %246 {offsets = [0, 6], sizes = [8, 1], strides = [1, 1]} : vector<8x25xf32> to vector<8x1xf32>
    %286 = vector.broadcast %285 : vector<8x1xf32> to vector<8x256xf32>
    %287 = arith.mulf %286, %253 : vector<8x256xf32>
    %288 = arith.addf %284, %287 : vector<8x256xf32>
    %289 = vector.extract_strided_slice %246 {offsets = [0, 7], sizes = [8, 1], strides = [1, 1]} : vector<8x25xf32> to vector<8x1xf32>
    %290 = vector.broadcast %289 : vector<8x1xf32> to vector<8x256xf32>
    %291 = arith.mulf %290, %245 : vector<8x256xf32>
    %292 = arith.addf %288, %291 : vector<8x256xf32>
    %293 = vector.extract_strided_slice %246 {offsets = [0, 8], sizes = [8, 1], strides = [1, 1]} : vector<8x25xf32> to vector<8x1xf32>
    %294 = vector.broadcast %293 : vector<8x1xf32> to vector<8x256xf32>
    %295 = arith.mulf %294, %256 : vector<8x256xf32>
    %296 = arith.addf %292, %295 : vector<8x256xf32>
    %297 = vector.extract_strided_slice %246 {offsets = [0, 9], sizes = [8, 1], strides = [1, 1]} : vector<8x25xf32> to vector<8x1xf32>
    %298 = vector.broadcast %297 : vector<8x1xf32> to vector<8x256xf32>
    %299 = arith.mulf %298, %259 : vector<8x256xf32>
    %300 = arith.addf %296, %299 : vector<8x256xf32>
    %c16_i32_57 = arith.constant 16 : i32
    %301 = tpu.dynamic_rotate %300 by %c16_i32_57 dim 1 : vector<8x256xf32>, i32 -> vector<8x256xf32>
    %302 = vector.broadcast %71 : vector<1x256xf32> to vector<8x256xf32>
    %303 = arith.mulf %302, %301 : vector<8x256xf32>
    %304 = arith.addf %281, %303 : vector<8x256xf32>
    %305 = vector.extract_strided_slice %246 {offsets = [0, 10], sizes = [8, 1], strides = [1, 1]} : vector<8x25xf32> to vector<8x1xf32>
    %306 = vector.broadcast %305 : vector<8x1xf32> to vector<8x256xf32>
    %307 = arith.mulf %306, %250 : vector<8x256xf32>
    %308 = vector.extract_strided_slice %246 {offsets = [0, 11], sizes = [8, 1], strides = [1, 1]} : vector<8x25xf32> to vector<8x1xf32>
    %309 = vector.broadcast %308 : vector<8x1xf32> to vector<8x256xf32>
    %310 = arith.mulf %309, %253 : vector<8x256xf32>
    %311 = arith.addf %307, %310 : vector<8x256xf32>
    %312 = vector.extract_strided_slice %246 {offsets = [0, 12], sizes = [8, 1], strides = [1, 1]} : vector<8x25xf32> to vector<8x1xf32>
    %313 = vector.broadcast %312 : vector<8x1xf32> to vector<8x256xf32>
    %314 = arith.mulf %313, %245 : vector<8x256xf32>
    %315 = arith.addf %311, %314 : vector<8x256xf32>
    %316 = vector.extract_strided_slice %246 {offsets = [0, 13], sizes = [8, 1], strides = [1, 1]} : vector<8x25xf32> to vector<8x1xf32>
    %317 = vector.broadcast %316 : vector<8x1xf32> to vector<8x256xf32>
    %318 = arith.mulf %317, %256 : vector<8x256xf32>
    %319 = arith.addf %315, %318 : vector<8x256xf32>
    %320 = vector.extract_strided_slice %246 {offsets = [0, 14], sizes = [8, 1], strides = [1, 1]} : vector<8x25xf32> to vector<8x1xf32>
    %321 = vector.broadcast %320 : vector<8x1xf32> to vector<8x256xf32>
    %322 = arith.mulf %321, %259 : vector<8x256xf32>
    %323 = arith.addf %319, %322 : vector<8x256xf32>
    %324 = arith.addf %304, %323 : vector<8x256xf32>
    %325 = vector.extract_strided_slice %246 {offsets = [0, 15], sizes = [8, 1], strides = [1, 1]} : vector<8x25xf32> to vector<8x1xf32>
    %326 = vector.broadcast %325 : vector<8x1xf32> to vector<8x256xf32>
    %327 = arith.mulf %326, %250 : vector<8x256xf32>
    %328 = vector.extract_strided_slice %246 {offsets = [0, 16], sizes = [8, 1], strides = [1, 1]} : vector<8x25xf32> to vector<8x1xf32>
    %329 = vector.broadcast %328 : vector<8x1xf32> to vector<8x256xf32>
    %330 = arith.mulf %329, %253 : vector<8x256xf32>
    %331 = arith.addf %327, %330 : vector<8x256xf32>
    %332 = vector.extract_strided_slice %246 {offsets = [0, 17], sizes = [8, 1], strides = [1, 1]} : vector<8x25xf32> to vector<8x1xf32>
    %333 = vector.broadcast %332 : vector<8x1xf32> to vector<8x256xf32>
    %334 = arith.mulf %333, %245 : vector<8x256xf32>
    %335 = arith.addf %331, %334 : vector<8x256xf32>
    %336 = vector.extract_strided_slice %246 {offsets = [0, 18], sizes = [8, 1], strides = [1, 1]} : vector<8x25xf32> to vector<8x1xf32>
    %337 = vector.broadcast %336 : vector<8x1xf32> to vector<8x256xf32>
    %338 = arith.mulf %337, %256 : vector<8x256xf32>
    %339 = arith.addf %335, %338 : vector<8x256xf32>
    %340 = vector.extract_strided_slice %246 {offsets = [0, 19], sizes = [8, 1], strides = [1, 1]} : vector<8x25xf32> to vector<8x1xf32>
    %341 = vector.broadcast %340 : vector<8x1xf32> to vector<8x256xf32>
    %342 = arith.mulf %341, %259 : vector<8x256xf32>
    %343 = arith.addf %339, %342 : vector<8x256xf32>
    %c240_i32_58 = arith.constant 240 : i32
    %344 = tpu.dynamic_rotate %343 by %c240_i32_58 dim 1 : vector<8x256xf32>, i32 -> vector<8x256xf32>
    %345 = vector.broadcast %82 : vector<1x256xf32> to vector<8x256xf32>
    %346 = arith.mulf %345, %344 : vector<8x256xf32>
    %347 = arith.addf %324, %346 : vector<8x256xf32>
    %348 = vector.extract_strided_slice %246 {offsets = [0, 20], sizes = [8, 1], strides = [1, 1]} : vector<8x25xf32> to vector<8x1xf32>
    %349 = vector.broadcast %348 : vector<8x1xf32> to vector<8x256xf32>
    %350 = arith.mulf %349, %250 : vector<8x256xf32>
    %351 = vector.extract_strided_slice %246 {offsets = [0, 21], sizes = [8, 1], strides = [1, 1]} : vector<8x25xf32> to vector<8x1xf32>
    %352 = vector.broadcast %351 : vector<8x1xf32> to vector<8x256xf32>
    %353 = arith.mulf %352, %253 : vector<8x256xf32>
    %354 = arith.addf %350, %353 : vector<8x256xf32>
    %355 = vector.extract_strided_slice %246 {offsets = [0, 22], sizes = [8, 1], strides = [1, 1]} : vector<8x25xf32> to vector<8x1xf32>
    %356 = vector.broadcast %355 : vector<8x1xf32> to vector<8x256xf32>
    %357 = arith.mulf %356, %245 : vector<8x256xf32>
    %358 = arith.addf %354, %357 : vector<8x256xf32>
    %359 = vector.extract_strided_slice %246 {offsets = [0, 23], sizes = [8, 1], strides = [1, 1]} : vector<8x25xf32> to vector<8x1xf32>
    %360 = vector.broadcast %359 : vector<8x1xf32> to vector<8x256xf32>
    %361 = arith.mulf %360, %256 : vector<8x256xf32>
    %362 = arith.addf %358, %361 : vector<8x256xf32>
    %363 = vector.extract_strided_slice %246 {offsets = [0, 24], sizes = [8, 1], strides = [1, 1]} : vector<8x25xf32> to vector<8x1xf32>
    %364 = vector.broadcast %363 : vector<8x1xf32> to vector<8x256xf32>
    %365 = arith.mulf %364, %259 : vector<8x256xf32>
    %366 = arith.addf %362, %365 : vector<8x256xf32>
    %c224_i32_59 = arith.constant 224 : i32
    %367 = tpu.dynamic_rotate %366 by %c224_i32_59 dim 1 : vector<8x256xf32>, i32 -> vector<8x256xf32>
    %368 = vector.broadcast %93 : vector<1x256xf32> to vector<8x256xf32>
    %369 = arith.mulf %368, %367 : vector<8x256xf32>
    %370 = arith.addf %347, %369 : vector<8x256xf32>
    %371 = vector.broadcast %247 : vector<8x1xf32> to vector<8x256xf32>
    %372 = arith.addf %370, %371 : vector<8x256xf32>
    %373 = vector.extract_strided_slice %245 {offsets = [0, 0], sizes = [4, 256], strides = [1, 1]} : vector<8x256xf32> to vector<4x256xf32>
    %374 = vector.extract_strided_slice %0 {offsets = [0, 0], sizes = [4, 256], strides = [1, 1]} : vector<16x256xf32> to vector<4x256xf32>
    %375 = arith.addf %373, %374 : vector<4x256xf32>
    %c0_60 = arith.constant 0 : index
    %c0_61 = arith.constant 0 : index
    %376 = vector.load %arg11[%c0_60, %c0_61] : memref<16x256xf32, #tpu.memory_space<vmem>>, vector<4x256xf32>
    tpu.vector_store %arg11[%c0_60, %c0_61], %375 {strides = array<i32>} : memref<16x256xf32, #tpu.memory_space<vmem>>, vector<4x256xf32>,
    %377 = vector.extract_strided_slice %372 {offsets = [0, 0], sizes = [4, 256], strides = [1, 1]} : vector<8x256xf32> to vector<4x256xf32>
    %378 = vector.extract_strided_slice %0 {offsets = [4, 0], sizes = [4, 256], strides = [1, 1]} : vector<16x256xf32> to vector<4x256xf32>
    %379 = arith.addf %377, %378 : vector<4x256xf32>
    %c4 = arith.constant 4 : index
    %c0_62 = arith.constant 0 : index
    %380 = vector.load %arg11[%c4, %c0_62] : memref<16x256xf32, #tpu.memory_space<vmem>>, vector<4x256xf32>
    tpu.vector_store %arg11[%c4, %c0_62], %379 {strides = array<i32>} : memref<16x256xf32, #tpu.memory_space<vmem>>, vector<4x256xf32>,
    %381 = vector.extract_strided_slice %245 {offsets = [4, 0], sizes = [4, 256], strides = [1, 1]} : vector<8x256xf32> to vector<4x256xf32>
    %382 = vector.extract_strided_slice %0 {offsets = [8, 0], sizes = [4, 256], strides = [1, 1]} : vector<16x256xf32> to vector<4x256xf32>
    %383 = arith.addf %381, %382 : vector<4x256xf32>
    %c8 = arith.constant 8 : index
    %c0_63 = arith.constant 0 : index
    %384 = vector.load %arg11[%c8, %c0_63] : memref<16x256xf32, #tpu.memory_space<vmem>>, vector<4x256xf32>
    tpu.vector_store %arg11[%c8, %c0_63], %383 {strides = array<i32>} : memref<16x256xf32, #tpu.memory_space<vmem>>, vector<4x256xf32>,
    %385 = vector.extract_strided_slice %372 {offsets = [4, 0], sizes = [4, 256], strides = [1, 1]} : vector<8x256xf32> to vector<4x256xf32>
    %386 = vector.extract_strided_slice %0 {offsets = [12, 0], sizes = [4, 256], strides = [1, 1]} : vector<16x256xf32> to vector<4x256xf32>
    %387 = arith.addf %385, %386 : vector<4x256xf32>
    %c12 = arith.constant 12 : index
    %c0_64 = arith.constant 0 : index
    %388 = vector.load %arg11[%c12, %c0_64] : memref<16x256xf32, #tpu.memory_space<vmem>>, vector<4x256xf32>
    tpu.vector_store %arg11[%c12, %c0_64], %387 {strides = array<i32>} : memref<16x256xf32, #tpu.memory_space<vmem>>, vector<4x256xf32>,
    return
  }
  func.func @transform_0(%arg0: i32) -> (i32, i32) {
    %c0_i32 = arith.constant 0 : i32
    %c0_i32_0 = arith.constant 0 : i32
    return %arg0, %c0_i32 : i32, i32
  }
  func.func @transform_1(%arg0: i32) -> (i32, i32) {
    %c0_i32 = arith.constant 0 : i32
    %c0_i32_0 = arith.constant 0 : i32
    %c0_i32_1 = arith.constant 0 : i32
    return %c0_i32, %c0_i32_0 : i32, i32
  }
  func.func @transform_2(%arg0: i32) -> (i32, i32) {
    %c0_i32 = arith.constant 0 : i32
    %c0_i32_0 = arith.constant 0 : i32
    %c0_i32_1 = arith.constant 0 : i32
    return %c0_i32, %c0_i32_0 : i32, i32
  }
  func.func @transform_3(%arg0: i32) -> (i32, i32) {
    %c0_i32 = arith.constant 0 : i32
    %c0_i32_0 = arith.constant 0 : i32
    %c0_i32_1 = arith.constant 0 : i32
    return %c0_i32, %c0_i32_0 : i32, i32
  }
  func.func @transform_4(%arg0: i32) -> (i32, i32) {
    %c0_i32 = arith.constant 0 : i32
    %c0_i32_0 = arith.constant 0 : i32
    %c0_i32_1 = arith.constant 0 : i32
    return %c0_i32, %c0_i32_0 : i32, i32
  }
  func.func @transform_5(%arg0: i32) -> (i32, i32) {
    %c0_i32 = arith.constant 0 : i32
    %c0_i32_0 = arith.constant 0 : i32
    %c0_i32_1 = arith.constant 0 : i32
    return %c0_i32, %c0_i32_0 : i32, i32
  }
  func.func @transform_6(%arg0: i32) -> (i32, i32) {
    %c0_i32 = arith.constant 0 : i32
    %c0_i32_0 = arith.constant 0 : i32
    %c0_i32_1 = arith.constant 0 : i32
    return %c0_i32, %c0_i32_0 : i32, i32
  }
  func.func @transform_7(%arg0: i32) -> (i32, i32) {
    %c0_i32 = arith.constant 0 : i32
    %c0_i32_0 = arith.constant 0 : i32
    %c0_i32_1 = arith.constant 0 : i32
    return %c0_i32, %c0_i32_0 : i32, i32
  }
  func.func @transform_8(%arg0: i32) -> (i32, i32) {
    %c0_i32 = arith.constant 0 : i32
    %c0_i32_0 = arith.constant 0 : i32
    %c0_i32_1 = arith.constant 0 : i32
    return %c0_i32, %c0_i32_0 : i32, i32
  }
  func.func @transform_9(%arg0: i32) -> (i32, i32) {
    %c0_i32 = arith.constant 0 : i32
    %c0_i32_0 = arith.constant 0 : i32
    %c0_i32_1 = arith.constant 0 : i32
    return %c0_i32, %c0_i32_0 : i32, i32
  }
  func.func @transform_10(%arg0: i32) -> (i32, i32) {
    %c0_i32 = arith.constant 0 : i32
    %c0_i32_0 = arith.constant 0 : i32
    return %arg0, %c0_i32 : i32, i32
  }
}

</mosaic_0001>

<bundles_post_ra>
// kernel: ghost_bottleneck_forward.1
= control target key start
LH: loop header
LB: loop body
LE: loop exit
PB: predicated region body
PF: predicated region fallthrough
CT: control target
= control target key end

     0   :  { %v1893_v3 = vmov 0   ;;  %v1118_v4 = vmov 5   ;;  %vm149_vm0 = vcmask 130048   ;;  %v1119_v8 = vmov 1   ;;  %s1137_s27 = smov 126   ;;  %s1148_s30 = smov 16   ;;  %s1877_s0 = inlined_call_operand.vmem [shape: f32[16,256], index: 0, kind: input, shape index: {}]   ;;  %s1878_s1 = inlined_call_operand.vmem [shape: f32[4,16], index: 1, kind: input, shape index: {}]   ;;  %s1879_s2 = inlined_call_operand.vmem [shape: f32[4,1], index: 2, kind: input, shape index: {}]   ;;  %s1880_s3 = inlined_call_operand.vmem [shape: f32[4,25], index: 3, kind: input, shape index: {}]   ;;  %s1881_s4 = inlined_call_operand.vmem [shape: f32[4,1], index: 4, kind: input, shape index: {}]   ;;  %s1882_s8 = inlined_call_operand.vmem [shape: f32[8,25], index: 8, kind: input, shape index: {}]   ;;  %s1883_s7 = inlined_call_operand.vmem [shape: f32[8,1], index: 7, kind: input, shape index: {}]   ;;  %s1884_s6 = inlined_call_operand.vmem [shape: f32[8,4], index: 6, kind: input, shape index: {}]   ;;  %s1885_s5 = inlined_call_operand.vmem [shape: f32[8,4], index: 5, kind: input, shape index: {}]   ;;  %s1886_s10 = inlined_call_operand.vmem [shape: f32[16,256], index: 10, kind: output, shape index: {}]   ;;  %s1887_s9 = inlined_call_operand.vmem [shape: f32[8,1], index: 9, kind: input, shape index: {}]  }
   0x1   :  { %v37_v0 = vld [vmem:[%s1877_s0 + $0x10] sm:$0xff]  ;;  %v38_v1 = vld [vmem:[%s1877_s0 + $0x18] sm:$0xff]  ;;  %v35_v2 = vld [vmem:[%s1877_s0] sm:$0xff]  ;;  %1043 = vset.pattern.permute.xlu0 %v1893_v3  ;;  %1045 = vset.pattern.permute.xlu2 %v1118_v4  ;;  %v1120_v10 = vmov 7   ;;  %v1121_v11 = vmov 2   ;;  %v1122_v12 = vmov 8  }
   0x2   :  { %167 = vmatpush.msra.mxu0 %v37_v0  ;;  %187 = vmatpush.msra.mxu1 %v38_v1  ;;  %v36_v5 = vld [vmem:[%s1877_s0 + $0x8] sm:$0xff]  ;;  %v142_v6 = vld [vmem:[%s1878_s1] sm:$0xf]  ;;  %v1123_v13 = vmov 4   ;;  %v1900_v14 = vmov 17   ;;  %v1125_v15 = vmov 3  }
   0x3   :  { %v143_v7 = vld [vmem:[%s1879_s2] sm:$0xf]  ;;  %1044 = vset.pattern.permute.xlu1 %v1119_v8  ;;  %v1897_v16 = vmov 16   ;;  %v1127_v17 = vmov 6   ;;  %v1128_v18 = vmov 9   ;;  %v1129_v19 = vmov 15  }
   0x4   :  { %168 = vmatpush.msra.mxu0 %v35_v2  ;;  %188 = vmatpush.msra.mxu1 %v36_v5  ;;  %v1230_v9 = vld [vmem:[%s1880_s3] sm:$0xf]  ;;  %v1898_v28 = vmov 18   ;;  %v1896_v29 = vmov 21   ;;  %v1132_v32 = vmov 20   ;;  %s1133_s1 = smov 2  }
   0x5   :  { %995 = vmatmul.msk.f32.vlgmr.msra.gmra.mxu0 %vm149_vm0, %v142_v6  ;;  %996 = vmatmul.msk.f32.vlgmr.msra.gmra.mxu1 %vm149_vm0, %v142_v6  ;;  %s1134_s2 = smov 1   ;;  %s1135_s3 = smov 127   ;;  %v1136_v56 = vmov 23   ;;  %v1892_v57 = vmov 19   ;;  %v1895_v58 = vmov 22   ;;  %v1889_v59 = vmov 13  }
   0x6   :  { %146 = vperm.xlu0 %1043, %v143_v7   ;;  %320 = vperm.xlu2 %1045, %v1230_v9   ;;  %v1141_v60 = vmov 10   ;;  %v1891_v61 = vmov 24   ;;  %v1888_v62 = vmov 14   ;;  %v1890_v63 = vmov 12   ;;  %s1149_s11 = smov 112   ;;  %s1150_s12 = smov 96  }
   0x7   :  { %279 = vperm.xlu1 %1044, %v1230_v9   ;;  %v1899_v0 = vmov 11  }
   0xe   :  { %273 = vperm.xlu0 %1043, %v1230_v9   ;;  %1048 = vset.pattern.permute.xlu2 %v1120_v10 }
   0xf   :  { %334 = vperm.xlu2 %1048, %v1230_v9   ;;  %1047 = vset.pattern.permute.xlu1 %v1121_v11 }
  0x10   :  { %287 = vperm.xlu1 %1047, %v1230_v9  }
  0x16   :  { %1046 = vset.pattern.permute.xlu0 %v1127_v17 }
  0x17   :  { %1050 = vset.pattern.permute.xlu2 %v1122_v12  ;;  %326 = vperm.xlu0 %1046, %v1230_v9  }
  0x18   :  { %342 = vperm.xlu2 %1050, %v1230_v9   ;;  %1049 = vset.pattern.permute.xlu1 %v1125_v15 }
  0x19   :  { %295 = vperm.xlu1 %1049, %v1230_v9  }
  0x1f   :  { %1051 = vset.pattern.permute.xlu0 %v1129_v19 }
  0x20   :  { %1053 = vset.pattern.permute.xlu2 %v1123_v13  ;;  %409 = vperm.xlu0 %1051, %v1230_v9  }
  0x21   :  { %303 = vperm.xlu2 %1053, %v1230_v9   ;;  %1052 = vset.pattern.permute.xlu1 %v1897_v16 }
  0x22   :  { %415 = vperm.xlu1 %1052, %v1230_v9  }
  0x28   :  { %1056 = vset.pattern.permute.xlu0 %v1132_v32 }
  0x29   :  { %1055 = vset.pattern.permute.xlu2 %v1900_v14 }
  0x2a   :  { %423 = vperm.xlu2 %1055, %v1230_v9   ;;  %1054 = vset.pattern.permute.xlu1 %v1128_v18 }
  0x2b   :  { %350 = vperm.xlu1 %1054, %v1230_v9  }
  0x32   :  { %1058 = vset.pattern.permute.xlu2 %v1898_v28 }
  0x33   :  { %1057 = vset.pattern.permute.xlu1 %v1896_v29 }
  0x60   :  { %v1300_v1 = vpop.permute.xlu2 %320 }
  0x69   :  { %v1304_v2 = vpop.permute.xlu2 %334 }
  0x72   :  { %v1306_v6 = vpop.permute.xlu2 %342 }
  0x78   :  { %v147_v20 = vpop.permute.xlu0 %146 }
  0x79   :  { %v280_v5 = vpop.permute.xlu1 %279 }
  0x82   :  { %v170_v21 = vpop.f32.mrf.mxu0  ;;  %v190_v22 = vpop.f32.mrf.mxu1 }
  0x83   :  { %v171_v23 = vadd.f32 %v170_v21, %v147_v20  ;;  %v191_v24 = vadd.f32 %v190_v22, %v147_v20  ;;  %v1308_v7 = vpop.permute.xlu1 %287  ;;  %v1312_v21 = vpop.permute.xlu2 %303 }
  0x85   :  { %v997_v25 = vmul.f32 -1.442695, %v171_v23  ;;  %v998_v26 = vmul.f32 -1.442695, %v191_v24 }
  0x87   :  { %1097 = vpow2.f32 %v997_v25  ;;  %v39_v25 = vlaneseq }
  0x88   :  { %1099 = vpow2.f32 %v998_v26 }
  0x8b   :  { %v1310_v20 = vpop.permute.xlu1 %295 }
  0x8d   :  { %v1098_v27 = vpop.eup %1097 }
  0x8e   :  { %v1100_v30 = vpop.eup %1099  ;;  %v199_v31 = vadd.f32 1.0, %v1098_v27 }
  0x8f   :  { %v200_v33 = vadd.f32 1.0, %v1100_v30  ;;  %v1322_v30 = vand.u32 127, %v39_v25 }
  0x90   :  { %1101 = vrcp.f32 %v199_v31  ;;  %v212_v39 = vand.u32 2147483648, %v199_v31  ;;  %v210_v42 = vand.u32 2147483647, %v199_v31  ;;  %vm206_vm3 = vweird.f32 %v199_v31 }
  0x91   :  { %1103 = vrcp.f32 %v200_v33  ;;  %v227_v43 = vand.u32 2147483648, %v200_v33  ;;  %v225_v45 = vand.u32 2147483647, %v200_v33  ;;  %vm221_vm5 = vweird.f32 %v200_v33 }
  0x92   :  { %v213_v47 = vor.u32 1.1754944e-38, %v212_v39  ;;  %vm211_vm6 = vcmp.eq.f32.partialorder %v210_v42, 8.507059e+37  ;;  %vm248_vm11 = vcmp.lt.s32.totalorder %v1322_v30, 1  ;;  %vm239_vm14 = vcmp.lt.s32.totalorder %v1322_v30, 2 }
  0x93   :  { %v228_v50 = vor.u32 1.1754944e-38, %v227_v43  ;;  %vm226_vm8 = vcmp.eq.f32.partialorder %v225_v45, 8.507059e+37 }
  0x94   :  { %v1314_v22 = vpop.permute.xlu1 %415 }
  0x96   :  { %v1102_v34 = vpop.eup %1101 }
  0x97   :  { %v1104_v35 = vpop.eup %1103  ;;  %v202_v36 = vmul.f32 %v1102_v34, %v199_v31  ;;  %vm207_vm1 = vweird.f32 %v1102_v34 }
  0x98   :  { %v217_v37 = vmul.f32 %v1104_v35, %v200_v33  ;;  %vm222_vm2 = vweird.f32 %v1104_v35  ;;  %vm208_vm4 = vmor %vm206_vm3, %vm207_vm1  ;;  %v1327_v33 = vadd.s32 128, %v1322_v30  ;;  %vm1902_vm1 = vcmp.lt.s32.totalorder %v1322_v30, 127 }
  0x99   :  { %v203_v38 = vsub.f32 1.0, %v202_v36  ;;  %vm223_vm7 = vmor %vm221_vm5, %vm222_vm2 }
  0x9a   :  { %v218_v40 = vsub.f32 1.0, %v217_v37 }
  0x9b   :  { %v204_v41 = vmul.f32 %v1102_v34, %v203_v38 }
  0x9c   :  { %v219_v44 = vmul.f32 %v1104_v35, %v218_v40 }
  0x9d   :  { %v205_v46 = vadd.f32 %v1102_v34, %v204_v41  ;;  %v1320_v27 = vpop.permute.xlu1 %350 }
  0x9e   :  { %v220_v48 = vadd.f32 %v1104_v35, %v219_v44  ;;  %v1146_v44 = vmov 0.0  }
  0x9f   :  { %v209_v49 = vsel %vm208_vm4, %v1102_v34, %v205_v46  ;;  %v42_v34 = vand.u32 15, %v1322_v30  ;;  %vm1901_vm4 = vcmp.lt.s32.totalorder %v1322_v30, 126 }
  0xa0   :  { %v214_v51 = vsel %vm211_vm6, %v213_v47, %v209_v49  ;;  %v224_v52 = vsel %vm223_vm7, %v1104_v35, %v220_v48  ;;  %v43_v35 = vand.u32 15, %v1327_v33 }
  0xa1   :  { %v1258_v53 = vmul.f32 %v214_v51, %v171_v23  ;;  %v229_v54 = vsel %vm226_vm8, %v228_v50, %v224_v52  ;;  %v1316_v23 = vpop.permute.xlu2 %423  ;;  %v58_v38 = vadd.s32 4294967295, %v42_v34  ;;  %v46_v40 = vadd.s32 4294967294, %v42_v34 }
  0xa2   :  { %v1260_v55 = vmul.f32 %v229_v54, %v191_v24  ;;  %v59_v39 = vadd.s32 4294967295, %v43_v35  ;;  %v47_v41 = vadd.s32 4294967294, %v43_v35  ;;  %v70_v25 = vadd.s32 1, %v42_v34 }
  0xa3   :  { %235 = vrot.lane.b32.xlu0 %v1258_v53, %s1133_s1  ;;  %vm60_vm9 = vcmp.ge.s32.totalorder %v58_v38, 0  ;;  %vm48_vm12 = vcmp.ge.s32.totalorder %v46_v40, 0  ;;  %v71_v38 = vadd.s32 1, %v43_v35 }
  0xa4   :  { %246 = vrot.lane.b32.xlu2 %v1260_v55, %s1134_s2  ;;  %237 = vrot.lane.b32.xlu1 %v1260_v55, %s1133_s1  ;;  %vm61_vm10 = vcmp.ge.s32.totalorder %v59_v39, 0  ;;  %vm49_vm13 = vcmp.ge.s32.totalorder %v47_v41, 0  ;;  %v1334_v45 = vsel %vm60_vm9, 1.0, %v1146_v44  ;;  %v1346_v50 = vsel %vm48_vm12, 1.0, %v1146_v44 }
  0xa5   :  { %v1337_v46 = vsel %vm61_vm10, 1.0, %v1146_v44  ;;  %v1349_v51 = vsel %vm49_vm13, 1.0, %v1146_v44  ;;  %vm74_vm15 = vcmp.lt.s32.totalorder %v70_v25, 16  ;;  %vm75_vm0 = vcmp.lt.s32.totalorder %v71_v38, 16 }
  0xa6   :  { %v1378_v25 = vsel %vm75_vm0, 1.0, %v1146_v44  ;;  %v338_v28 = vmul.f32 %v1304_v2, %v1260_v55 }
  0xab   :  { %255 = vrot.lane.b32.xlu0 %v1260_v55, %s1135_s3 }
  0xac   :  { %253 = vrot.lane.b32.xlu2 %v1258_v53, %s1135_s3  ;;  %244 = vrot.lane.b32.xlu1 %v1258_v53, %s1134_s2 }
  0xb3   :  { %458 = vperm.xlu0 %1056, %v1230_v9  }
  0xb4   :  { %431 = vperm.xlu2 %1058, %v1230_v9   ;;  %464 = vperm.xlu1 %1057, %v1230_v9  }
  0xbb   :  { %1061 = vset.pattern.permute.xlu0 %v1136_v56 }
  0xbc   :  { %264 = vrot.lane.b32.xlu2 %v1260_v55, %s1137_s27  ;;  %262 = vrot.lane.b32.xlu1 %v1258_v53, %s1137_s27 }
  0xbd   :  { %480 = vperm.xlu0 %1061, %v1230_v9   ;;  %1060 = vset.pattern.permute.xlu2 %v1892_v57 }
  0xbe   :  { %1059 = vset.pattern.permute.xlu1 %v1895_v58 }
  0xc4   :  { %439 = vperm.xlu2 %1060, %v1230_v9   ;;  %472 = vperm.xlu1 %1059, %v1230_v9  }
  0xc5   :  { %1066 = vset.pattern.permute.xlu0 %v1889_v59 }
  0xc6   :  { %391 = vperm.xlu0 %1066, %v1230_v9  }
  0xcc   :  { %1063 = vset.pattern.permute.xlu2 %v1141_v60  ;;  %1062 = vset.pattern.permute.xlu1 %v1891_v61  ;;  %v291_v61 = vmul.f32 %v1308_v7, %v1260_v55 }
  0xcd   :  { %369 = vperm.xlu2 %1063, %v1230_v9   ;;  %488 = vperm.xlu1 %1062, %v1230_v9  }
  0xce   :  { %1067 = vset.pattern.permute.xlu0 %v1888_v62  ;;  %v83_v62 = vadd.s32 2, %v43_v35 }
  0xcf   :  { %399 = vperm.xlu0 %1067, %v1230_v9  }
  0xd0   :  { %vm87_vm3 = vcmp.lt.s32.totalorder %v83_v62, 16 }
  0xd5   :  { %1065 = vset.pattern.permute.xlu2 %v1890_v63  ;;  %1064 = vset.pattern.permute.xlu1 %v1899_v0 }
  0xd6   :  { %383 = vperm.xlu2 %1065, %v1230_v9   ;;  %375 = vperm.xlu1 %1064, %v1230_v9   ;;  %v274_v9 = vpop.permute.xlu0 %273 }
  0xd7   :  { %1068 = vset.pattern.permute.xlu0 %v1893_v3 }
  0xde   :  { %1070 = vset.pattern.permute.xlu2 %v1893_v3  ;;  %1069 = vset.pattern.permute.xlu1 %v1893_v3  ;;  %v1318_v24 = vpop.permute.xlu0 %326 }
  0xe6   :  { %v1324_v31 = vpop.permute.xlu0 %409 }
  0xfe   :  { %v247_v26 = vpop.permute.xlu2 %246 }
 0x106   :  { %v254_v36 = vpop.permute.xlu2 %253 }
 0x10e   :  { %v1343_v49 = vpop.permute.xlu2 %431 }
 0x115   :  { %v236_v42 = vpop.permute.xlu0 %235 }
 0x116   :  { %v238_v37 = vpop.permute.xlu1 %237  ;;  %v265_v35 = vpop.permute.xlu2 %264 }
 0x117   :  { %v240_v52 = vsel %vm239_vm14, %v236_v42, %v238_v37  ;;  %v241_v54 = vsel %vm239_vm14, %v238_v37, %v236_v42  ;;  %v82_v42 = vadd.s32 2, %v42_v34 }
 0x118   :  { %v1362_v40 = vmul.f32 %v1346_v50, %v241_v54  ;;  %v1365_v41 = vmul.f32 %v1349_v51, %v240_v52  ;;  %v1375_v52 = vsel %vm74_vm15, 1.0, %v1146_v44 }
 0x119   :  { %vm86_vm2 = vcmp.lt.s32.totalorder %v82_v42, 16 }
 0x11a   :  { %v277_v59 = vmul.f32 %v274_v9, %v1365_v41  ;;  %v276_v54 = vmul.f32 %v274_v9, %v1362_v40  ;;  %v290_v9 = vmul.f32 %v1308_v7, %v1258_v53  ;;  %v323_v58 = vmul.f32 %v1300_v1, %v1362_v40 }
 0x11e   :  { %v245_v43 = vpop.permute.xlu1 %244  ;;  %v440_v0 = vpop.permute.xlu2 %439 }
 0x11f   :  { %v249_v47 = vsel %vm248_vm11, %v245_v43, %v247_v26  ;;  %v250_v48 = vsel %vm248_vm11, %v247_v26, %v245_v43  ;;  %v256_v43 = vpop.permute.xlu0 %255 }
 0x120   :  { %v1356_v39 = vmul.f32 %v1334_v45, %v250_v48  ;;  %v1359_v26 = vmul.f32 %v1337_v46, %v249_v47  ;;  %v258_v38 = vsel %vm1902_vm1, %v254_v36, %v256_v43  ;;  %v259_v34 = vsel %vm1902_vm1, %v256_v43, %v254_v36 }
 0x121   :  { %v1389_v57 = vmul.f32 %v1375_v52, %v258_v38  ;;  %v1392_v3 = vmul.f32 %v1378_v25, %v259_v34  ;;  %v1396_v36 = vsel %vm86_vm2, 1.0, %v1146_v44  ;;  %v324_v34 = vmul.f32 %v1300_v1, %v1365_v41 }
 0x122   :  { %v283_v48 = vmul.f32 %v280_v5, %v1359_v26  ;;  %v282_v47 = vmul.f32 %v280_v5, %v1356_v39  ;;  %v330_v62 = vmul.f32 %v1318_v24, %v1359_v26  ;;  %v329_v7 = vmul.f32 %v1318_v24, %v1356_v39  ;;  %v234_v24 = vld [vmem:[%s1881_s4] sm:$0xf]  ;;  %s1147_s4 = smov 32  }
 0x123   :  { %508 = vperm.xlu0 %1068, %v234_v24   ;;  %vm361_vm2 = vcmp.lt.s32.totalorder %v1322_v30, 16 }
 0x124   :  { %v285_v5 = vadd.f32 %v283_v48, %v277_v59  ;;  %v284_v63 = vadd.f32 %v282_v47, %v276_v54  ;;  %v1399_v59 = vsel %vm87_vm3, 1.0, %v1146_v44 }
 0x126   :  { %v1368_v37 = vpop.permute.xlu1 %464  ;;  %v293_v48 = vadd.f32 %v291_v61, %v285_v5  ;;  %v292_v47 = vadd.f32 %v290_v9, %v284_v63  ;;  %v299_v63 = vmul.f32 %v1310_v20, %v1392_v3  ;;  %v332_v5 = vadd.f32 %v330_v62, %v324_v34 }
 0x127   :  { %v459_v43 = vpop.permute.xlu0 %458  ;;  %v331_v9 = vadd.f32 %v329_v7, %v323_v58  ;;  %v419_v58 = vmul.f32 %v1314_v22, %v1359_v26  ;;  %v346_v34 = vmul.f32 %v1306_v6, %v1392_v3 }
 0x128   :  { %v301_v1 = vadd.f32 %v299_v63, %v293_v48  ;;  %v340_v7 = vadd.f32 %v338_v28, %v332_v5  ;;  %v418_v48 = vmul.f32 %v1314_v22, %v1356_v39  ;;  %v345_v28 = vmul.f32 %v1306_v6, %v1389_v57 }
 0x12a   :  { %v348_v22 = vadd.f32 %v346_v34, %v340_v7  ;;  %v467_v7 = vmul.f32 %v1368_v37, %v1356_v39 }
 0x12b   :  { %1071 = vset.pattern.permute.xlu0 %v1119_v8 }
 0x12e   :  { %v263_v42 = vpop.permute.xlu1 %262 }
 0x12f   :  { %v267_v54 = vsel %vm1901_vm4, %v263_v42, %v265_v35  ;;  %v268_v38 = vsel %vm1901_vm4, %v265_v35, %v263_v42  ;;  %v298_v35 = vmul.f32 %v1310_v20, %v1389_v57  ;;  %vm314_vm4 = vcmp.lt.s32.totalorder %v1322_v30, 32 }
 0x130   :  { %v1417_v29 = vmul.f32 %v1396_v36, %v267_v54  ;;  %v1420_v61 = vmul.f32 %v1399_v59, %v268_v38  ;;  %v337_v38 = vmul.f32 %v1304_v2, %v1258_v53  ;;  %v413_v2 = vmul.f32 %v1324_v31, %v1365_v41 }
 0x131   :  { %v300_v16 = vadd.f32 %v298_v35, %v292_v47  ;;  %v481_v47 = vpop.permute.xlu0 %480 }
 0x132   :  { %v307_v42 = vmul.f32 %v1312_v21, %v1420_v61  ;;  %v306_v54 = vmul.f32 %v1312_v21, %v1417_v29  ;;  %v339_v21 = vadd.f32 %v337_v38, %v331_v9  ;;  %v353_v24 = vmul.f32 %v1320_v27, %v1417_v29 }
 0x133   :  { %v421_v35 = vadd.f32 %v419_v58, %v413_v2  ;;  %v427_v9 = vmul.f32 %v1316_v23, %v1260_v55  ;;  %v462_v38 = vmul.f32 %v459_v43, %v1365_v41  ;;  %v435_v58 = vmul.f32 %v1343_v49, %v1392_v3 }
 0x134   :  { %v309_v14 = vadd.f32 %v307_v42, %v301_v1  ;;  %v308_v20 = vadd.f32 %v306_v54, %v300_v16  ;;  %v412_v16 = vmul.f32 %v1324_v31, %v1362_v40  ;;  %v347_v63 = vadd.f32 %v345_v28, %v339_v21  ;;  %v370_v54 = vpop.permute.xlu2 %369 }
 0x135   :  { %v426_v31 = vmul.f32 %v1316_v23, %v1258_v53  ;;  %v429_v6 = vadd.f32 %v427_v9, %v421_v35  ;;  %v434_v23 = vmul.f32 %v1343_v49, %v1389_v57  ;;  %v468_v21 = vmul.f32 %v1368_v37, %v1359_v26 }
 0x136   :  { %v473_v62 = vpop.permute.xlu1 %472  ;;  %312 = vrot.lane.b32.xlu2 %v309_v14, %s1147_s4  ;;  %310 = vrot.lane.b32.xlu1 %v308_v20, %s1147_s4  ;;  %v354_v14 = vmul.f32 %v1320_v27, %v1420_v61  ;;  %v420_v5 = vadd.f32 %v418_v48, %v412_v16  ;;  %v355_v42 = vadd.f32 %v353_v24, %v347_v63 }
 0x137   :  { %v461_v27 = vmul.f32 %v459_v43, %v1362_v40  ;;  %v443_v48 = vmul.f32 %v440_v0, %v1420_v61  ;;  %v442_v2 = vmul.f32 %v440_v0, %v1417_v29  ;;  %v475_v16 = vmul.f32 %v473_v62, %v1258_v53 }
 0x138   :  { %v356_v1 = vadd.f32 %v354_v14, %v348_v22  ;;  %v428_v8 = vadd.f32 %v426_v31, %v420_v5  ;;  %v476_v43 = vmul.f32 %v473_v62, %v1260_v55  ;;  %v437_v14 = vadd.f32 %v435_v58, %v429_v6 }
 0x139   :  { %v392_v34 = vpop.permute.xlu0 %391  ;;  %v469_v24 = vadd.f32 %v467_v7, %v461_v27  ;;  %v470_v22 = vadd.f32 %v468_v21, %v462_v38  ;;  %v483_v0 = vmul.f32 %v481_v47, %v1389_v57  ;;  %v484_v37 = vmul.f32 %v481_v47, %v1392_v3 }
 0x13a   :  { %v436_v28 = vadd.f32 %v434_v23, %v428_v8  ;;  %v445_v49 = vadd.f32 %v443_v48, %v437_v14  ;;  %v373_v6 = vmul.f32 %v370_v54, %v1365_v41 }
 0x13b   :  { %v477_v35 = vadd.f32 %v475_v16, %v469_v24  ;;  %v478_v5 = vadd.f32 %v476_v43, %v470_v22  ;;  %v394_v16 = vmul.f32 %v392_v34, %v1389_v57 }
 0x13c   :  { %v444_v63 = vadd.f32 %v442_v2, %v436_v28  ;;  %v384_v31 = vpop.permute.xlu2 %383 }
 0x13d   :  { %v485_v38 = vadd.f32 %v483_v0, %v477_v35  ;;  %v486_v58 = vadd.f32 %v484_v37, %v478_v5  ;;  %v386_v23 = vmul.f32 %v384_v31, %v1258_v53  ;;  %v387_v47 = vmul.f32 %v384_v31, %v1260_v55 }
 0x13e   :  { %359 = vrot.lane.b32.xlu2 %v356_v1, %s1148_s30  ;;  %357 = vrot.lane.b32.xlu1 %v355_v42, %s1148_s30  ;;  %v372_v42 = vmul.f32 %v370_v54, %v1362_v40  ;;  %v395_v40 = vmul.f32 %v392_v34, %v1392_v3  ;;  %v44_v3 = vshra.s32 %v1322_v30, 4  ;;  %v45_v34 = vshra.s32 %v1327_v33, 4 }
 0x13f   :  { %v489_v20 = vpop.permute.xlu1 %488 }
 0x140   :  { %v491_v62 = vmul.f32 %v489_v20, %v1417_v29  ;;  %v492_v9 = vmul.f32 %v489_v20, %v1420_v61  ;;  %v94_v5 = vadd.s32 4294967294, %v44_v3  ;;  %v118_v0 = vadd.s32 1, %v44_v3 }
 0x141   :  { %v400_v20 = vpop.permute.xlu0 %399  ;;  %v119_v37 = vadd.s32 1, %v45_v34 }
 0x142   :  { %v493_v48 = vadd.f32 %v491_v62, %v485_v38  ;;  %v494_v2 = vadd.f32 %v492_v9, %v486_v58  ;;  %vm96_vm10 = vcmp.ge.s32.totalorder %v94_v5, 0  ;;  %vm98_vm12 = vcmp.lt.s32.totalorder %v94_v5, 16 }
 0x143   :  { %vm100_vm3 = vmand %vm96_vm10, %vm98_vm12  ;;  %vm121_vm1 = vcmp.ge.s32.totalorder %v119_v37, 0  ;;  %v130_v62 = vadd.s32 2, %v44_v3  ;;  %vm450_vm10 = vcmp.lt.s32.totalorder %v1322_v30, 112 }
 0x146   :  { %448 = vrot.lane.b32.xlu2 %v445_v49, %s1149_s11  ;;  %446 = vrot.lane.b32.xlu1 %v444_v63, %s1149_s11  ;;  %v106_v49 = vadd.s32 4294967295, %v44_v3  ;;  %v107_v63 = vadd.s32 4294967295, %v45_v34 }
 0x148   :  { %v376_v1 = vpop.permute.xlu1 %375  ;;  %vm108_vm5 = vcmp.ge.s32.totalorder %v106_v49, 0  ;;  %vm110_vm6 = vcmp.lt.s32.totalorder %v106_v49, 16  ;;  %vm109_vm7 = vcmp.ge.s32.totalorder %v107_v63, 0  ;;  %vm111_vm8 = vcmp.lt.s32.totalorder %v107_v63, 16 }
 0x149   :  { %v378_v8 = vmul.f32 %v376_v1, %v1356_v39  ;;  %v379_v27 = vmul.f32 %v376_v1, %v1359_v26  ;;  %v402_v39 = vmul.f32 %v400_v20, %v1417_v29  ;;  %v403_v26 = vmul.f32 %v400_v20, %v1420_v61  ;;  %vm112_vm9 = vmand %vm108_vm5, %vm110_vm6 }
 0x14a   :  { %v95_v29 = vadd.s32 4294967294, %v45_v34  ;;  %vm113_vm13 = vmand %vm109_vm7, %vm111_vm8  ;;  %v1500_v33 = vsel %vm112_vm9, 1.0, %v1146_v44  ;;  %vm120_vm6 = vcmp.ge.s32.totalorder %v118_v0, 0  ;;  %vm122_vm7 = vcmp.lt.s32.totalorder %v118_v0, 16 }
 0x14b   :  { %v380_v7 = vadd.f32 %v378_v8, %v372_v42  ;;  %v381_v21 = vadd.f32 %v379_v27, %v373_v6  ;;  %v1503_v31 = vsel %vm113_vm13, 1.0, %v1146_v44  ;;  %vm123_vm8 = vcmp.lt.s32.totalorder %v119_v37, 16  ;;  %vm124_vm9 = vmand %vm120_vm6, %vm122_vm7 }
 0x14c   :  { %vm97_vm15 = vcmp.ge.s32.totalorder %v95_v29, 0  ;;  %vm99_vm0 = vcmp.lt.s32.totalorder %v95_v29, 16  ;;  %v131_v42 = vadd.s32 2, %v45_v34  ;;  %v1510_v8 = vsel %vm100_vm3, 1.0, %v1146_v44  ;;  %vm125_vm12 = vmand %vm121_vm1, %vm123_vm8 }
 0x14d   :  { %v388_v41 = vadd.f32 %v386_v23, %v380_v7  ;;  %v389_v54 = vadd.f32 %v387_v47, %v381_v21  ;;  %vm101_vm5 = vmand %vm97_vm15, %vm99_vm0  ;;  %vm132_vm13 = vcmp.ge.s32.totalorder %v130_v62, 0  ;;  %vm134_vm15 = vcmp.lt.s32.totalorder %v130_v62, 16 }
 0x14e   :  { %497 = vrot.lane.b32.xlu2 %v494_v2, %s1150_s12  ;;  %495 = vrot.lane.b32.xlu1 %v493_v48, %s1150_s12  ;;  %v1513_v27 = vsel %vm101_vm5, 1.0, %v1146_v44  ;;  %vm133_vm0 = vcmp.ge.s32.totalorder %v131_v42, 0  ;;  %vm135_vm3 = vcmp.lt.s32.totalorder %v131_v42, 16  ;;  %v1526_v2 = vsel %vm124_vm9, 1.0, %v1146_v44  ;;  %vm136_vm1 = vmand %vm132_vm13, %vm134_vm15 }
 0x14f   :  { %v396_v43 = vadd.f32 %v394_v16, %v388_v41  ;;  %v397_v14 = vadd.f32 %v395_v40, %v389_v54  ;;  %v1529_v20 = vsel %vm125_vm12, 1.0, %v1146_v44  ;;  %vm137_vm5 = vmand %vm133_vm0, %vm135_vm3  ;;  %vm499_vm6 = vcmp.lt.s32.totalorder %v1322_v30, 96 }
 0x150   :  { %vm560_vm3 = vcmask 1043456  }
 0x151   :  { %v1491_v28 = vadd.f32 %v402_v39, %v396_v43  ;;  %v1493_v24 = vadd.f32 %v403_v26, %v397_v14  ;;  %v1539_v43 = vsel %vm136_vm1, 1.0, %v1146_v44  ;;  %v1542_v14 = vsel %vm137_vm5, 1.0, %v1146_v44 }
 0x152   :  { %vm556_vm5 = vcmask 31744  }
 0x190   :  { %v313_v57 = vpop.permute.xlu2 %312 }
 0x195   :  { %v509_v44 = vpop.permute.xlu0 %508 }
 0x198   :  { %v360_v35 = vpop.permute.xlu2 %359 }
 0x1a0   :  { %v449_v6 = vpop.permute.xlu2 %448 }
 0x1a8   :  { %v311_v22 = vpop.permute.xlu1 %310 }
 0x1a9   :  { %v315_v38 = vsel %vm314_vm4, %v311_v22, %v313_v57  ;;  %v316_v58 = vsel %vm314_vm4, %v313_v57, %v311_v22  ;;  %v498_v57 = vpop.permute.xlu2 %497 }
 0x1aa   :  { %v317_v21 = vmul.f32 %v1510_v8, %v316_v58  ;;  %v318_v48 = vmul.f32 %v1513_v27, %v315_v38 }
 0x1b0   :  { %v358_v61 = vpop.permute.xlu1 %357 }
 0x1b1   :  { %v362_v9 = vsel %vm361_vm2, %v358_v61, %v360_v35  ;;  %v363_v1 = vsel %vm361_vm2, %v360_v35, %v358_v61 }
 0x1b2   :  { %v364_v23 = vmul.f32 %v1500_v33, %v363_v1  ;;  %v365_v47 = vmul.f32 %v1503_v31, %v362_v9  ;;  %v1558_v1 = vld [vmem:[%s1882_s8] sm:$0xff] }
 0x1b3   :  { %699 = vperm.xlu2 %1070, %v1558_v1   ;;  %705 = vperm.xlu0 %1071, %v1558_v1  }
 0x1b4   :  { %v366_v41 = vadd.f32 %v364_v23, %v317_v21  ;;  %v367_v54 = vadd.f32 %v365_v47, %v318_v48 }
 0x1b6   :  { %v406_v3 = vadd.f32 %v1491_v28, %v366_v41  ;;  %v407_v34 = vadd.f32 %v1493_v24, %v367_v54 }
 0x1b8   :  { %v447_v7 = vpop.permute.xlu1 %446 }
 0x1b9   :  { %v451_v16 = vsel %vm450_vm10, %v447_v7, %v449_v6  ;;  %v452_v40 = vsel %vm450_vm10, %v449_v6, %v447_v7  ;;  %v555_v6 = vld [vmem:[%s1883_s7] sm:$0xff] }
 0x1ba   :  { %v453_v39 = vmul.f32 %v1526_v2, %v451_v16  ;;  %v454_v26 = vmul.f32 %v1529_v20, %v452_v40  ;;  %658 = vperm.xlu1 %1069, %v555_v6  }
 0x1bb   :  { %1073 = vset.pattern.permute.xlu2 %v1125_v15  ;;  %1077 = vset.pattern.permute.xlu0 %v1120_v10 }
 0x1bc   :  { %v455_v35 = vadd.f32 %v453_v39, %v406_v3  ;;  %v456_v5 = vadd.f32 %v454_v26, %v407_v34  ;;  %721 = vperm.xlu2 %1073, %v1558_v1   ;;  %759 = vperm.xlu0 %1077, %v1558_v1  }
 0x1c0   :  { %v496_v22 = vpop.permute.xlu1 %495 }
 0x1c1   :  { %v500_v49 = vsel %vm499_vm6, %v496_v22, %v498_v57  ;;  %v501_v63 = vsel %vm499_vm6, %v498_v57, %v496_v22 }
 0x1c2   :  { %v502_v29 = vmul.f32 %v1539_v43, %v500_v49  ;;  %v503_v61 = vmul.f32 %v1542_v14, %v501_v63  ;;  %1072 = vset.pattern.permute.xlu1 %v1121_v11 }
 0x1c3   :  { %713 = vperm.xlu1 %1072, %v1558_v1  }
 0x1c4   :  { %v504_v0 = vadd.f32 %v502_v29, %v455_v35  ;;  %v505_v37 = vadd.f32 %v503_v61, %v456_v5  ;;  %1076 = vset.pattern.permute.xlu2 %v1127_v17  ;;  %1080 = vset.pattern.permute.xlu0 %v1141_v60  ;;  %v554_v35 = vld [vmem:[%s1884_s6] sm:$0xff] }
 0x1c5   :  { %751 = vperm.xlu2 %1076, %v1558_v1   ;;  %793 = vperm.xlu0 %1080, %v1558_v1  }
 0x1c6   :  { %v511_v62 = vadd.f32 %v509_v44, %v504_v0  ;;  %v1552_v28 = vadd.f32 %v509_v44, %v505_v37 }
 0x1c8   :  { %v999_v24 = vmul.f32 -1.442695, %v511_v62  ;;  %v1000_v9 = vmul.f32 -1.442695, %v1552_v28 }
 0x1ca   :  { %1105 = vpow2.f32 %v999_v24  ;;  %v1624_v24 = vld [vmem:[%s1877_s0 + $0x18] sm:$0xff] }
 0x1cb   :  { %1107 = vpow2.f32 %v1000_v9  ;;  %1074 = vset.pattern.permute.xlu1 %v1123_v13  ;;  %v553_v13 = vld [vmem:[%s1885_s5] sm:$0xff]  ;;  %v958_v9 = vrot.slane %v1624_v24, 4 }
 0x1cc   :  { %729 = vperm.xlu1 %1074, %v1558_v1  }
 0x1cd   :  { %1079 = vset.pattern.permute.xlu2 %v1128_v18  ;;  %1085 = vset.pattern.permute.xlu0 %v1132_v32  ;;  %v1904_v18 = vmov 11   ;;  %v1906_v32 = vmov 16  }
 0x1ce   :  { %775 = vperm.xlu2 %1079, %v1558_v1   ;;  %881 = vperm.xlu0 %1085, %v1558_v1  }
 0x1d0   :  { %v1106_v42 = vpop.eup %1105 }
 0x1d1   :  { %v1108_v38 = vpop.eup %1107  ;;  %v519_v58 = vadd.f32 1.0, %v1106_v42 }
 0x1d2   :  { %v520_v23 = vadd.f32 1.0, %v1108_v38  ;;  %v1636_v38 = vld [vmem:[%s1877_s0] sm:$0xff] }
 0x1d3   :  { %1109 = vrcp.f32 %v519_v58  ;;  %v532_v10 = vand.u32 2147483648, %v519_v58  ;;  %v530_v41 = vand.u32 2147483647, %v519_v58  ;;  %vm526_vm9 = vweird.f32 %v519_v58 }
 0x1d4   :  { %1111 = vrcp.f32 %v520_v23  ;;  %v547_v11 = vand.u32 2147483648, %v520_v23  ;;  %v545_v39 = vand.u32 2147483647, %v520_v23  ;;  %vm541_vm13 = vweird.f32 %v520_v23  ;;  %1075 = vset.pattern.permute.xlu1 %v1118_v4 }
 0x1d5   :  { %v533_v17 = vor.u32 1.1754944e-38, %v532_v10  ;;  %vm531_vm15 = vcmp.eq.f32.partialorder %v530_v41, 8.507059e+37  ;;  %745 = vperm.xlu1 %1075, %v1558_v1   ;;  %v1903_v4 = vmov 17   ;;  %v1909_v10 = vmov 0  }
 0x1d6   :  { %v548_v3 = vor.u32 1.1754944e-38, %v547_v11  ;;  %vm546_vm1 = vcmp.eq.f32.partialorder %v545_v39, 8.507059e+37  ;;  %1082 = vset.pattern.permute.xlu2 %v1129_v19  ;;  %1090 = vset.pattern.permute.xlu0 %v1136_v56  ;;  %v1905_v19 = vmov 18   ;;  %v1912_v11 = vmov 12  }
 0x1d7   :  { %833 = vperm.xlu2 %1082, %v1558_v1  }
 0x1d9   :  { %v1110_v47 = vpop.eup %1109 }
 0x1da   :  { %v1112_v7 = vpop.eup %1111  ;;  %v522_v21 = vmul.f32 %v1110_v47, %v519_v58  ;;  %vm527_vm7 = vweird.f32 %v1110_v47 }
 0x1db   :  { %v537_v48 = vmul.f32 %v1112_v7, %v520_v23  ;;  %vm542_vm8 = vweird.f32 %v1112_v7  ;;  %vm528_vm12 = vmor %vm526_vm9, %vm527_vm7  ;;  %v1647_v23 = vld [vmem:[%s1877_s0 + $0x8] sm:$0xff]  ;;  %vm1917_vm7 = vcmp.lt.s32.totalorder %v1322_v30, 126 }
 0x1dc   :  { %v523_v15 = vsub.f32 1.0, %v522_v21  ;;  %vm543_vm0 = vmor %vm541_vm13, %vm542_vm8 }
 0x1dd   :  { %v538_v16 = vsub.f32 1.0, %v537_v48  ;;  %1078 = vset.pattern.permute.xlu1 %v1122_v12  ;;  %v1908_v12 = vmov 22   ;;  %vm1918_vm8 = vmmov %vm1917_vm7 }
 0x1de   :  { %v524_v40 = vmul.f32 %v1110_v47, %v523_v15  ;;  %767 = vperm.xlu1 %1078, %v1558_v1  }
 0x1df   :  { %v539_v54 = vmul.f32 %v1112_v7, %v538_v16  ;;  %1084 = vset.pattern.permute.xlu2 %v1903_v4  ;;  %v1910_v16 = vmov 19  }
 0x1e0   :  { %v525_v26 = vadd.f32 %v1110_v47, %v524_v40  ;;  %847 = vperm.xlu2 %1084, %v1558_v1   ;;  %v1911_v40 = vmov 24  }
 0x1e1   :  { %v540_v57 = vadd.f32 %v1112_v7, %v539_v54  ;;  %v1913_v54 = vmov 13  }
 0x1e2   :  { %v529_v60 = vsel %vm528_vm12, %v1110_v47, %v525_v26  ;;  %v1914_v26 = vmov 14  }
 0x1e3   :  { %v534_v34 = vsel %vm531_vm15, %v533_v17, %v529_v60  ;;  %v544_v22 = vsel %vm543_vm0, %v1112_v7, %v540_v57 }
 0x1e4   :  { %v551_v49 = vmul.f32 %v534_v34, %v511_v62  ;;  %v549_v63 = vsel %vm546_vm1, %v548_v3, %v544_v22  ;;  %v1618_v62 = vld [vmem:[%s1877_s0 + $0x10] sm:$0xff] }
 0x1e5   :  { %v552_v5 = vmul.f32 %v549_v63, %v1552_v28  ;;  %v957_v28 = vrot.slane %v1618_v62, 4 }
 0x1e6   :  { %1001 = vmatpush.msk.msra.mxu2 %vm560_vm3, %v551_v49  ;;  %1081 = vset.pattern.permute.xlu1 %v1904_v18 }
 0x1e7   :  { %1003 = vmatpush.msk.msra.mxu3 %vm560_vm3, %v552_v5  ;;  %1002 = vmatmul.msk.f32.vlgmr.msra.gmra.mxu2 %vm556_vm5, %v554_v35 }
 0x1e8   :  { %1004 = vmatmul.msk.f32.vlgmr.msra.gmra.mxu3 %vm556_vm5, %v554_v35  ;;  %1005 = vmatpush.msk.msrb.mxu2 %vm560_vm3, %v1258_v53  ;;  %v1907_v53 = vmov 21  }
 0x1e9   :  { %1007 = vmatpush.msk.msrb.mxu3 %vm560_vm3, %v1260_v55  ;;  %799 = vperm.xlu1 %1081, %v1558_v1  }
 0x1ea   :  { %1087 = vset.pattern.permute.xlu2 %v1905_v19 }
 0x1ef   :  { %1006 = vmatmul.msk.f32.vlgmr.msrb.gmra.mxu2 %vm556_vm5, %v553_v13 }
 0x1f0   :  { %1008 = vmatmul.msk.f32.vlgmr.msrb.gmra.mxu3 %vm556_vm5, %v553_v13 }
 0x1f1   :  { %1083 = vset.pattern.permute.xlu1 %v1906_v32 }
 0x1f2   :  { %839 = vperm.xlu1 %1083, %v1558_v1  }
 0x1fa   :  { %1086 = vset.pattern.permute.xlu1 %v1907_v53 }
 0x1fb   :  { %887 = vperm.xlu1 %1086, %v1558_v1  }
 0x203   :  { %1088 = vset.pattern.permute.xlu1 %v1908_v12 }
 0x20d   :  { %v700_v41 = vpop.permute.xlu2 %699 }
 0x216   :  { %v1688_v17 = vpop.permute.xlu2 %721 }
 0x21f   :  { %v1694_v60 = vpop.permute.xlu2 %751 }
 0x225   :  { %v706_v49 = vpop.permute.xlu0 %705 }
 0x228   :  { %v1698_v34 = vpop.permute.xlu2 %775 }
 0x22c   :  { %v659_v0 = vpop.permute.xlu1 %658 }
 0x22e   :  { %v1702_v5 = vpop.permute.xlu0 %759 }
 0x231   :  { %v834_v63 = vpop.permute.xlu2 %833 }
 0x235   :  { %v714_v39 = vpop.permute.xlu1 %713 }
 0x237   :  { %v794_v4 = vpop.permute.xlu0 %793 }
 0x23a   :  { %v1704_v13 = vpop.permute.xlu2 %847 }
 0x23e   :  { %v1692_v57 = vpop.permute.xlu1 %729 }
 0x240   :  { %v1706_v19 = vpop.permute.xlu0 %881 }
 0x247   :  { %v1696_v3 = vpop.permute.xlu1 %745 }
 0x250   :  { %v1700_v22 = vpop.permute.xlu1 %767 }
 0x25b   :  { %v800_v35 = vpop.permute.xlu1 %799 }
 0x26a   :  { %v584_v55 = vpop.f32.mrf.mxu2 }
 0x26b   :  { %v604_v56 = vpop.f32.mrf.mxu3 }
 0x272   :  { %v633_v29 = vpop.f32.mrf.mxu2 }
 0x273   :  { %v634_v61 = vadd.f32 %v633_v29, %v584_v55  ;;  %v653_v44 = vpop.f32.mrf.mxu3 }
 0x274   :  { %v654_v37 = vadd.f32 %v653_v44, %v604_v56 }
 0x275   :  { %v1627_v42 = vadd.f32 %v659_v0, %v634_v61 }
 0x276   :  { %v1629_v6 = vadd.f32 %v659_v0, %v654_v37 }
 0x277   :  { %665 = vrot.lane.b32.xlu2 %v1627_v42, %s1133_s1  ;;  %v935_v58 = vadd.f32 %v1636_v38, %v1627_v42  ;;  %v961_v7 = vadd.f32 %v957_v28, %v1627_v42 }
 0x278   :  { %675 = vrot.lane.b32.xlu0 %v1629_v6, %s1134_s2  ;;  %667 = vrot.lane.b32.xlu1 %v1629_v6, %s1133_s1  ;;  %v936_v47 = vadd.f32 %v1647_v23, %v1629_v6  ;;  %v962_v21 = vadd.f32 %v958_v9, %v1629_v6 }
 0x279   :  { %937 = vst [vmem:[%s1886_s10] sm:$0xf] %v935_v58  ;;  %v965_v48 = vrot.slane %v961_v7, 4 }
 0x27a   :  { %938 = vst [vmem:[%s1886_s10 + $0x8] sm:$0xf] %v936_v47  ;;  %v966_v15 = vrot.slane %v962_v21, 4 }
 0x27b   :  { %969 = vst [vmem:[%s1886_s10 + $0x10] sm:$0xf] %v965_v48 }
 0x27c   :  { %970 = vst [vmem:[%s1886_s10 + $0x18] sm:$0xf] %v966_v15 }
 0x27f   :  { %673 = vrot.lane.b32.xlu2 %v1627_v42, %s1134_s2 }
 0x280   :  { %689 = vrot.lane.b32.xlu0 %v1627_v42, %s1137_s27  ;;  %681 = vrot.lane.b32.xlu1 %v1627_v42, %s1135_s3 }
 0x287   :  { %683 = vrot.lane.b32.xlu2 %v1629_v6, %s1135_s3 }
 0x288   :  { %903 = vperm.xlu0 %1090, %v1558_v1   ;;  %691 = vrot.lane.b32.xlu1 %v1629_v6, %s1137_s27 }
 0x28f   :  { %855 = vperm.xlu2 %1087, %v1558_v1  }
 0x290   :  { %895 = vperm.xlu1 %1088, %v1558_v1   ;;  %1096 = vset.pattern.permute.xlu0 %v1909_v10 }
 0x297   :  { %1089 = vset.pattern.permute.xlu2 %v1910_v16  ;;  %v717_v16 = vmul.f32 %v714_v39, %v1629_v6 }
 0x298   :  { %1091 = vset.pattern.permute.xlu1 %v1911_v40  ;;  %863 = vperm.xlu2 %1089, %v1558_v1  }
 0x299   :  { %911 = vperm.xlu1 %1091, %v1558_v1  }
 0x2a0   :  { %1092 = vset.pattern.permute.xlu2 %v1912_v11  ;;  %v716_v11 = vmul.f32 %v714_v39, %v1627_v42 }
 0x2a1   :  { %1093 = vset.pattern.permute.xlu1 %v1913_v54  ;;  %807 = vperm.xlu2 %1092, %v1558_v1  }
 0x2a2   :  { %815 = vperm.xlu1 %1093, %v1558_v1  }
 0x2a9   :  { %1094 = vset.pattern.permute.xlu2 %v1914_v26 }
 0x2aa   :  { %823 = vperm.xlu2 %1094, %v1558_v1   ;;  %1095 = vset.pattern.permute.xlu1 %v1909_v10  ;;  %v840_v1 = vpop.permute.xlu1 %839 }
 0x2b2   :  { %v1708_v32 = vpop.permute.xlu1 %887 }
 0x2d1   :  { %v666_v18 = vpop.permute.xlu2 %665 }
 0x2d9   :  { %v674_v53 = vpop.permute.xlu2 %673 }
 0x2e1   :  { %v684_v58 = vpop.permute.xlu2 %683 }
 0x2ea   :  { %v676_v12 = vpop.permute.xlu0 %675  ;;  %v668_v55 = vpop.permute.xlu1 %667 }
 0x2eb   :  { %v677_v56 = vsel %vm248_vm11, %v674_v53, %v676_v12  ;;  %v678_v29 = vsel %vm248_vm11, %v676_v12, %v674_v53  ;;  %v669_v61 = vsel %vm239_vm14, %v666_v18, %v668_v55  ;;  %v670_v44 = vsel %vm239_vm14, %v668_v55, %v666_v18  ;;  %v856_v12 = vpop.permute.xlu2 %855 }
 0x2ec   :  { %v1719_v0 = vmul.f32 %v1334_v45, %v678_v29  ;;  %v1722_v37 = vmul.f32 %v1337_v46, %v677_v56  ;;  %v1725_v28 = vmul.f32 %v1346_v50, %v670_v44  ;;  %v1728_v9 = vmul.f32 %v1349_v51, %v669_v61 }
 0x2ed   :  { %vm1915_vm11 = vcmp.lt.s32.totalorder %v1322_v30, 127  ;;  %v762_v29 = vmul.f32 %v1702_v5, %v1627_v42 }
 0x2ee   :  { %v796_v47 = vmul.f32 %v794_v4, %v1725_v28  ;;  %v797_v7 = vmul.f32 %v794_v4, %v1728_v9  ;;  %v802_v21 = vmul.f32 %v800_v35, %v1719_v0  ;;  %v803_v48 = vmul.f32 %v800_v35, %v1722_v37  ;;  %vm1916_vm14 = vmmov %vm1915_vm11 }
 0x2ef   :  { %v703_v45 = vmul.f32 %v700_v41, %v1728_v9  ;;  %v709_v46 = vmul.f32 %v706_v49, %v1722_v37  ;;  %v702_v51 = vmul.f32 %v700_v41, %v1725_v28  ;;  %v708_v10 = vmul.f32 %v706_v49, %v1719_v0 }
 0x2f0   :  { %v1736_v15 = vadd.f32 %v802_v21, %v796_v47  ;;  %v1738_v50 = vadd.f32 %v803_v48, %v797_v7  ;;  %v748_v26 = vmul.f32 %v1696_v3, %v1725_v28  ;;  %v754_v35 = vmul.f32 %v1694_v60, %v1719_v0 }
 0x2f1   :  { %v711_v40 = vadd.f32 %v709_v46, %v703_v45  ;;  %v710_v4 = vadd.f32 %v708_v10, %v702_v51  ;;  %v836_v21 = vmul.f32 %v834_v63, %v1725_v28  ;;  %v842_v45 = vmul.f32 %v840_v1, %v1719_v0 }
 0x2f2   :  { %v682_v54 = vpop.permute.xlu1 %681  ;;  %v756_v56 = vadd.f32 %v754_v35, %v748_v26  ;;  %v690_v61 = vpop.permute.xlu0 %689  ;;  %v837_v10 = vmul.f32 %v834_v63, %v1728_v9 }
 0x2f3   :  { %v685_v18 = vsel %vm1915_vm11, %v682_v54, %v684_v58  ;;  %v686_v41 = vsel %vm1916_vm14, %v684_v58, %v682_v54  ;;  %v719_v49 = vadd.f32 %v717_v16, %v711_v40  ;;  %v718_v53 = vadd.f32 %v716_v11, %v710_v4  ;;  %v864_v35 = vpop.permute.xlu2 %863 }
 0x2f4   :  { %v1753_v55 = vmul.f32 %v1375_v52, %v685_v18  ;;  %v1756_v39 = vmul.f32 %v1378_v25, %v686_v41  ;;  %v764_v7 = vadd.f32 %v762_v29, %v756_v56  ;;  %v843_v16 = vmul.f32 %v840_v1, %v1722_v37 }
 0x2f5   :  { %v749_v40 = vmul.f32 %v1696_v3, %v1728_v9  ;;  %v755_v11 = vmul.f32 %v1694_v60, %v1722_v37  ;;  %v844_v18 = vadd.f32 %v842_v45, %v836_v21  ;;  %v850_v60 = vmul.f32 %v1704_v13, %v1627_v42 }
 0x2f6   :  { %v725_v47 = vmul.f32 %v1688_v17, %v1756_v39  ;;  %v770_v58 = vmul.f32 %v1700_v22, %v1753_v55  ;;  %v724_v48 = vmul.f32 %v1688_v17, %v1753_v55  ;;  %v845_v3 = vadd.f32 %v843_v16, %v837_v10 }
 0x2f7   :  { %v851_v56 = vmul.f32 %v1704_v13, %v1629_v6  ;;  %v859_v29 = vmul.f32 %v856_v12, %v1756_v39  ;;  %v891_v13 = vmul.f32 %v1708_v32, %v1722_v37 }
 0x2f8   :  { %v727_v54 = vadd.f32 %v725_v47, %v719_v49  ;;  %v772_v26 = vadd.f32 %v770_v58, %v764_v7  ;;  %v757_v49 = vadd.f32 %v755_v11, %v749_v40  ;;  %v771_v47 = vmul.f32 %v1700_v22, %v1756_v39 }
 0x2f9   :  { %v852_v7 = vadd.f32 %v850_v60, %v844_v18  ;;  %v853_v21 = vadd.f32 %v851_v56, %v845_v3 }
 0x2fa   :  { %v692_v44 = vpop.permute.xlu1 %691 }
 0x2fb   :  { %v693_v52 = vsel %vm1917_vm7, %v690_v61, %v692_v44  ;;  %v694_v25 = vsel %vm1918_vm8, %v692_v44, %v690_v61  ;;  %v763_v61 = vmul.f32 %v1702_v5, %v1629_v6  ;;  %v885_v44 = vmul.f32 %v1706_v19, %v1728_v9 }
 0x2fc   :  { %v1773_v46 = vmul.f32 %v1396_v36, %v693_v52  ;;  %v1776_v51 = vmul.f32 %v1399_v59, %v694_v25  ;;  %v726_v59 = vadd.f32 %v724_v48, %v718_v53  ;;  %v884_v5 = vmul.f32 %v1706_v19, %v1725_v28  ;;  %v808_v28 = vpop.permute.xlu2 %807 }
 0x2fd   :  { %v890_v52 = vmul.f32 %v1708_v32, %v1719_v0  ;;  %v765_v25 = vadd.f32 %v763_v61, %v757_v49  ;;  %v861_v22 = vadd.f32 %v859_v29, %v853_v21  ;;  %v893_v16 = vadd.f32 %v891_v13, %v885_v44 }
 0x2fe   :  { %v733_v17 = vmul.f32 %v1692_v57, %v1776_v51  ;;  %v778_v36 = vmul.f32 %v1698_v34, %v1773_v46  ;;  %v732_v63 = vmul.f32 %v1692_v57, %v1773_v46  ;;  %v858_v57 = vmul.f32 %v856_v12, %v1753_v55 }
 0x2ff   :  { %v866_v58 = vmul.f32 %v864_v35, %v1773_v46  ;;  %v867_v12 = vmul.f32 %v864_v35, %v1776_v51  ;;  %v779_v9 = vmul.f32 %v1698_v34, %v1776_v51  ;;  %v773_v10 = vadd.f32 %v771_v47, %v765_v25 }
 0x300   :  { %v735_v1 = vadd.f32 %v733_v17, %v727_v54  ;;  %v780_v4 = vadd.f32 %v778_v36, %v772_v26  ;;  %v734_v41 = vadd.f32 %v732_v63, %v726_v59  ;;  %v860_v48 = vadd.f32 %v858_v57, %v852_v7  ;;  %v904_v54 = vpop.permute.xlu0 %903 }
 0x301   :  { %v869_v11 = vadd.f32 %v867_v12, %v861_v22  ;;  %v892_v17 = vadd.f32 %v890_v52, %v884_v5  ;;  %v781_v19 = vadd.f32 %v779_v9, %v773_v10  ;;  %v907_v0 = vmul.f32 %v904_v54, %v1756_v39 }
 0x302   :  { %738 = vrot.lane.b32.xlu0 %v735_v1, %s1147_s4  ;;  %782 = vrot.lane.b32.xlu1 %v780_v4, %s1148_s30  ;;  %v896_v53 = vpop.permute.xlu1 %895  ;;  %v868_v40 = vadd.f32 %v866_v58, %v860_v48  ;;  %v906_v59 = vmul.f32 %v904_v54, %v1753_v55  ;;  %v664_v4 = vld [vmem:[%s1887_s9] sm:$0xff]  ;;  %v810_v3 = vmul.f32 %v808_v28, %v1627_v42 }
 0x303   :  { %736 = vrot.lane.b32.xlu2 %v734_v41, %s1147_s4  ;;  %v899_v37 = vmul.f32 %v896_v53, %v1629_v6  ;;  %v898_v45 = vmul.f32 %v896_v53, %v1627_v42  ;;  %v811_v60 = vmul.f32 %v808_v28, %v1629_v6 }
 0x304   :  { %v824_v49 = vpop.permute.xlu2 %823  ;;  %v812_v53 = vadd.f32 %v810_v3, %v1736_v15 }
 0x305   :  { %v901_v26 = vadd.f32 %v899_v37, %v893_v16  ;;  %v900_v34 = vadd.f32 %v898_v45, %v892_v17  ;;  %v813_v57 = vadd.f32 %v811_v60, %v1738_v50  ;;  %v826_v42 = vmul.f32 %v824_v49, %v1773_v46 }
 0x306   :  { %v827_v6 = vmul.f32 %v824_v49, %v1776_v51 }
 0x307   :  { %v909_v35 = vadd.f32 %v907_v0, %v901_v26  ;;  %v908_v1 = vadd.f32 %v906_v59, %v900_v34 }
 0x30a   :  { %870 = vrot.lane.b32.xlu0 %v868_v40, %s1149_s11  ;;  %872 = vrot.lane.b32.xlu1 %v869_v11, %s1149_s11 }
 0x30b   :  { %784 = vrot.lane.b32.xlu2 %v781_v19, %s1148_s30  ;;  %v912_v32 = vpop.permute.xlu1 %911 }
 0x30c   :  { %v915_v36 = vmul.f32 %v912_v32, %v1776_v51  ;;  %v914_v63 = vmul.f32 %v912_v32, %v1773_v46 }
 0x30e   :  { %v917_v18 = vadd.f32 %v915_v36, %v909_v35  ;;  %v916_v41 = vadd.f32 %v914_v63, %v908_v1 }
 0x312   :  { %920 = vrot.lane.b32.xlu0 %v917_v18, %s1150_s12  ;;  %930 = vperm.xlu1 %1095, %v664_v4  }
 0x313   :  { %918 = vrot.lane.b32.xlu2 %v916_v41, %s1150_s12 }
 0x314   :  { %v816_v56 = vpop.permute.xlu1 %815 }
 0x315   :  { %v818_v29 = vmul.f32 %v816_v56, %v1753_v55  ;;  %v819_v61 = vmul.f32 %v816_v56, %v1756_v39 }
 0x317   :  { %v820_v44 = vadd.f32 %v818_v29, %v812_v53  ;;  %v821_v13 = vadd.f32 %v819_v61, %v813_v57 }
 0x319   :  { %v828_v47 = vadd.f32 %v826_v42, %v820_v44  ;;  %v829_v7 = vadd.f32 %v827_v6, %v821_v13 }
 0x35d   :  { %v737_v58 = vpop.permute.xlu2 %736 }
 0x365   :  { %v785_v5 = vpop.permute.xlu2 %784 }
 0x36d   :  { %v919_v40 = vpop.permute.xlu2 %918 }
 0x374   :  { %v739_v21 = vpop.permute.xlu0 %738  ;;  %v783_v12 = vpop.permute.xlu1 %782 }
 0x375   :  { %v740_v15 = vsel %vm314_vm4, %v737_v58, %v739_v21  ;;  %v741_v50 = vsel %vm314_vm4, %v739_v21, %v737_v58  ;;  %v786_v55 = vsel %vm361_vm2, %v783_v12, %v785_v5  ;;  %v787_v39 = vsel %vm361_vm2, %v785_v5, %v783_v12 }
 0x376   :  { %v742_v46 = vmul.f32 %v1510_v8, %v741_v50  ;;  %v743_v51 = vmul.f32 %v1513_v27, %v740_v15  ;;  %v788_v52 = vmul.f32 %v1500_v33, %v787_v39  ;;  %v789_v25 = vmul.f32 %v1503_v31, %v786_v55 }
 0x378   :  { %v790_v45 = vadd.f32 %v788_v52, %v742_v46  ;;  %v791_v10 = vadd.f32 %v789_v25, %v743_v51 }
 0x37a   :  { %v830_v11 = vadd.f32 %v828_v47, %v790_v45  ;;  %v831_v33 = vadd.f32 %v829_v7, %v791_v10 }
 0x37c   :  { %v871_v9 = vpop.permute.xlu0 %870  ;;  %v873_v37 = vpop.permute.xlu1 %872 }
 0x37d   :  { %v874_v48 = vsel %vm450_vm10, %v871_v9, %v873_v37  ;;  %v875_v22 = vsel %vm450_vm10, %v873_v37, %v871_v9 }
 0x37e   :  { %v876_v16 = vmul.f32 %v1526_v2, %v874_v48  ;;  %v877_v8 = vmul.f32 %v1529_v20, %v875_v22  ;;  %v941_v2 = vrot.slane %v1636_v38, 4  ;;  %v942_v20 = vrot.slane %v1647_v23, 4 }
 0x380   :  { %v878_v28 = vadd.f32 %v876_v16, %v830_v11  ;;  %v879_v26 = vadd.f32 %v877_v8, %v831_v33 }
 0x384   :  { %v921_v27 = vpop.permute.xlu0 %920  ;;  %v931_v34 = vpop.permute.xlu1 %930 }
 0x385   :  { %v922_v31 = vsel %vm499_vm6, %v919_v40, %v921_v27  ;;  %v923_v54 = vsel %vm499_vm6, %v921_v27, %v919_v40 }
 0x386   :  { %v924_v17 = vmul.f32 %v1539_v43, %v922_v31  ;;  %v925_v19 = vmul.f32 %v1542_v14, %v923_v54 }
 0x388   :  { %v926_v32 = vadd.f32 %v924_v17, %v878_v28  ;;  %v927_v0 = vadd.f32 %v925_v19, %v879_v26 }
 0x38a   :  { %v933_v36 = vadd.f32 %v931_v34, %v926_v32  ;;  %v934_v59 = vadd.f32 %v931_v34, %v927_v0 }
 0x38c   :  { %v945_v63 = vadd.f32 %v941_v2, %v933_v36  ;;  %v946_v35 = vadd.f32 %v942_v20, %v934_v59  ;;  %v971_v30 = vadd.f32 %v1618_v62, %v933_v36  ;;  %v972_v1 = vadd.f32 %v1624_v24, %v934_v59 }
 0x38e   :  { %v949_v43 = vrot.slane %v945_v63, 4  ;;  %v950_v4 = vrot.slane %v946_v35, 4  ;;  %973 = vst [vmem:[%s1886_s10 + $0x10] sm:$0xf0] %v971_v30 }
 0x38f   :  { %974 = vst [vmem:[%s1886_s10 + $0x18] sm:$0xf0] %v972_v1 }
 0x390   :  { %953 = vst [vmem:[%s1886_s10] sm:$0xf0] %v949_v43 }
 0x391   :  { %954 = vst [vmem:[%s1886_s10 + $0x8] sm:$0xf0] %v950_v4 }

</bundles_post_ra>
